<compile_context>
chip_gen: v7x
topology: tpu7x:2x2x1
jax: 0.10.0
libtpu: 0.0.40
codegen_flags: <defaults>
</compile_context>

<pallas_src>
import numpy as np
import jax
import jax.numpy as jnp
from jax.experimental import pallas as pl
from jax.experimental.pallas import tpu as pltpu

MAX_SPAN_SIZE = 1
D = 768


# ----------------------------------------------------------------------------
# Transition-feature construction (mirrors NeuralWordAligner.__init__)
# ----------------------------------------------------------------------------
def convert_stateID_to_spanID(state_id, sent_length):
    # standard helper used by this aligner codebase; state 0 == NULL alignment
    state_id = state_id - 1
    if state_id < 0:
        return (-1, -1)
    for span_length in range(1, MAX_SPAN_SIZE + 1):
        lower = (span_length - 1) * sent_length - (span_length - 1) * (span_length - 2) // 2
        upper = span_length * sent_length - span_length * (span_length - 1) // 2
        if lower <= state_id < upper:
            return (state_id - lower, span_length)
    return (-1, -1)


def distortion_distance(state_i, state_j, sent_length):
    start_i, size_i = convert_stateID_to_spanID(state_i, sent_length)
    start_j, _ = convert_stateID_to_spanID(state_j, sent_length)
    return np.absolute(start_j - (start_i + size_i - 1) - 1)


def build_transition_features(len_B):
    extended_length_B = MAX_SPAN_SIZE * len_B - MAX_SPAN_SIZE * (MAX_SPAN_SIZE - 1) // 2
    tm = np.zeros((extended_length_B + 1, extended_length_B + 1, 6), dtype=np.float32)
    for j in range(extended_length_B + 1):
        for k in range(extended_length_B + 1):
            if k == 0 and j == 0:
                tm[j][k][1] = 1
            elif k > 0 and j == 0:
                tm[j][k][2] = 1
            elif k == 0 and j > 0:
                tm[j][k][3] = 1
            elif k > len_B and j <= len_B:
                tm[j][k][4] = 1
            elif k <= len_B and j > len_B:
                tm[j][k][5] = 1
            else:
                tm[j][k][0] = distortion_distance(k, j, len_B)
    return tm


# ----------------------------------------------------------------------------
# Pallas kernel: mlp1 (Linear(768,768) -> Tanh -> Linear(768,1)) on a tile of
# M rows of the flattened focusCube.  W1/b1/W2/b2 are held resident in VMEM
# (constant index maps); the 768->1 head is a VPU multiply + lane reduction.
# ----------------------------------------------------------------------------
def emission_kernel(focus_ref, w1_ref, b1_ref, w2row_ref, b2_ref, out_ref):
    # (tm, 768)bf16 @ (768, 768)bf16 -> f32 accumulation on the MXU
    h = jnp.tanh(
        jnp.dot(focus_ref[...], w1_ref[...], preferred_element_type=jnp.float32)
        + b1_ref[...]
    )
    # 768 -> 1 head as elementwise mul + cross-lane sum (avoids N=1 MXU matmul)
    out_ref[...] = (
        jnp.sum(h * w2row_ref[...], axis=-1, keepdims=True) + b2_ref[...]
    )


def aligner_forward_pallas(focusCube, params, trans_feat, *, tm_max=512):
    """focusCube: (len_A, len_B, 768).  Returns
    (output_both [len_A, len_B+1], transition_matrix [len_B+1, len_B+1])."""
    len_A, len_B, d = focusCube.shape
    assert d == D
    S = len_B + 1
    M = len_A * len_B

    w1, b1, w2, b2, mw, mb = params

    # Tile size: multiple of 128, capped at tm_max (fits v7x 64 MiB VMEM easily).
    m_tile = min(tm_max, ((M + 127) // 128) * 128)
    M_pad = ((M + m_tile - 1) // m_tile) * m_tile

    focus_flat = focusCube.reshape(M, D)
    if M_pad != M:
        focus_flat = jnp.pad(focus_flat, ((0, M_pad - M), (0, 0)))
    focus_bf16 = focus_flat.astype(jnp.bfloat16)
    w1_bf16 = w1.astype(jnp.bfloat16)
    w2_row = w2.reshape(1, D).astype(jnp.float32)
    b1_f32 = b1.reshape(1, D).astype(jnp.float32)
    b2_f32 = b2.reshape(1, 1).astype(jnp.float32)

    grid = (M_pad // m_tile,)
    emit = pl.pallas_call(
        emission_kernel,
        grid=grid,
        in_specs=[
            pl.BlockSpec((m_tile, D), lambda i: (i, 0)),   # focus tile (streamed)
            pl.BlockSpec((D, D), lambda i: (0, 0)),        # W1 (resident)
            pl.BlockSpec((1, D), lambda i: (0, 0)),        # b1 (resident)
            pl.BlockSpec((1, D), lambda i: (0, 0)),        # W2 row (resident)
            pl.BlockSpec((1, 1), lambda i: (0, 0)),        # b2 (resident)
        ],
        out_specs=pl.BlockSpec((m_tile, 1), lambda i: (i, 0)),
        out_shape=jax.ShapeDtypeStruct((M_pad, 1), jnp.float32),
        compiler_params=pltpu.CompilerParams(
            dimension_semantics=("parallel",),
            vmem_limit_bytes=32 * 1024 * 1024,
        ),
    )(focus_bf16, w1_bf16, b1_f32, w2_row, b2_f32)

    emit_core = emit[:M, 0].reshape(len_A, len_B)

    # Padded NULL column (F.pad adds an all-zero len_B column): mlp1(0) is the
    # constant tanh(b1) @ W2 + b2 -- no need to push zero rows through the MXU.
    null_const = jnp.tanh(b1_f32) @ w2.reshape(D, 1) + b2_f32          # (1, 1)
    null_col = jnp.broadcast_to(null_const, (len_A, 1))
    output_both = jnp.concatenate([emit_core, null_col], axis=1)       # (len_A, S)

    # mlp2: (S, S, 6) . (6,) + b -- tiny and input-independent; plain JAX.
    transition_matrix = (
        jnp.tensordot(trans_feat.astype(jnp.float32), mw[:, 0], axes=([2], [0]))
        + mb.reshape(())
    )

    return output_both, transition_matrix


# ----------------------------------------------------------------------------
# Host-side Viterbi decode (the original runs this in numpy on CPU as well)
# ----------------------------------------------------------------------------
def viterbi_decoder(emission_matrix, transition_matrix, len_A, extended_length_B,
                    max_span_size=MAX_SPAN_SIZE):
    emission_matrix = np.asarray(emission_matrix, dtype=np.float64)
    transition_matrix = np.asarray(transition_matrix, dtype=np.float64)
    T1 = np.zeros((len_A, extended_length_B + 1), dtype=float)
    T2 = np.zeros((len_A, extended_length_B + 1), dtype=int)
    T3 = np.zeros((len_A, extended_length_B + 1), dtype=int)
    for j in range(extended_length_B + 1):
        T1[0][j] = emission_matrix[0][j - 1]
        T2[0][j] = -1
        T3[0][j] = 1
    for i in range(1, len_A):
        for j in range(extended_length_B + 1):
            max_val = float('-inf')
            for span_size in range(1, min(i + 1, max_span_size) + 1):
                for k in range(extended_length_B + 1):
                    row = (i - (span_size - 1) + (span_size - 1) * len_A
                           - (span_size - 1) * (span_size - 2) // 2)
                    if i - span_size >= 0:
                        cur_val = (T1[i - span_size][k] + transition_matrix[j][k]
                                   + emission_matrix[row][j - 1])
                    else:
                        cur_val = emission_matrix[row][j - 1]
                    if cur_val > max_val:
                        T1[i][j] = cur_val
                        T2[i][j] = k
                        T3[i][j] = span_size
                        max_val = cur_val
    optimal_sequence = []
    max_val = float('-inf')
    max_idx = -1
    for j in range(extended_length_B + 1):
        if T1[len_A - 1][j] > max_val:
            max_idx = j
            max_val = T1[len_A - 1][j]
    i = len_A - 1
    while i >= 0:
        optimal_element = [max_idx] * T3[i][max_idx]
        optimal_sequence = optimal_element + optimal_sequence
        new_i = i - T3[i][max_idx]
        new_max_idx = T2[i][max_idx]
        i = new_i
        max_idx = new_max_idx
    return optimal_sequence


# TODO(synk): training-mode branch (_forward_alg CRF partition + _score_sentence
# gold score) is a sequential host-side loop in the original and is not ported.


if __name__ == "__main__":
    # Small deterministic example (the module fixes hidden dim at 768).
    len_A, len_B = 8, 8
    key = jax.random.PRNGKey(0)
    kf, k1, k2, k3 = jax.random.split(key, 4)

    # Synthetic focusCube standing in for the BERT pair encoder output.
    focusCube = jax.random.normal(kf, (len_A, len_B, D), dtype=jnp.float32)

    # Deterministic parameter init (mlp1: 768->768->1, mlp2: 6->1).
    W1 = jax.random.normal(k1, (D, D), dtype=jnp.float32) * 0.02
    b1 = jnp.zeros((1, D), dtype=jnp.float32)
    W2 = jax.random.normal(k2, (D, 1), dtype=jnp.float32) * 0.02
    b2 = jnp.zeros((1, 1), dtype=jnp.float32)
    MW = jax.random.normal(k3, (6, 1), dtype=jnp.float32) * 0.5
    MB = jnp.zeros((1, 1), dtype=jnp.float32)
    params = (W1, b1, W2, b2, MW, MB)

    # Transition features from __init__ for extended_length_B = len_B.
    trans_feat = jnp.asarray(build_transition_features(len_B))

    output_both, transition_matrix = aligner_forward_pallas(focusCube, params, trans_feat)
    jax.block_until_ready((output_both, transition_matrix))

    # Reference check against plain-JAX f32 mlp1 / mlp2 (loose tol for the
    # bf16-weight MXU path with f32 accumulation).
    focus_padded = jnp.pad(focusCube, ((0, 0), (0, 1), (0, 0)))  # F.pad(..., (0,0,0,1))
    ref_emit = jnp.tanh(focus_padded.reshape(-1, D) @ W1 + b1) @ W2 + b2
    ref_emit = ref_emit.reshape(len_A, len_B + 1)
    ref_trans = (trans_feat.reshape(-1, 6) @ MW + MB).reshape(len_B + 1, len_B + 1)
    assert np.allclose(np.asarray(output_both), np.asarray(ref_emit), atol=2e-2, rtol=2e-2)
    assert np.allclose(np.asarray(transition_matrix), np.asarray(ref_trans), atol=1e-4, rtol=1e-4)

    # Eval-mode forward return: (output_type, output_score, return_sequence)
    return_sequence = viterbi_decoder(np.asarray(output_both),
                                      np.asarray(transition_matrix),
                                      len_A, len_B)
    result = (None, None, return_sequence)
    assert len(result[2]) == len_A

    print("KERNEL_OK")
</pallas_src>

<mosaic_0001>
module attributes {stable_mosaic.version = 11 : i64} {
  func.func @emission_kernel(%arg0: i32, %arg1: memref<128x768xbf16, #tpu.memory_space<vmem>>, %arg2: memref<768x768xbf16, #tpu.memory_space<vmem>>, %arg3: memref<1x768xf32, #tpu.memory_space<vmem>>, %arg4: memref<1x768xf32, #tpu.memory_space<vmem>>, %arg5: memref<1x1xf32, #tpu.memory_space<vmem>>, %arg6: memref<128x1xf32, #tpu.memory_space<vmem>>) attributes {dimension_semantics = [#tpu.dimension_semantics<parallel>], iteration_bounds = array<i64: 1>, scalar_prefetch = 0 : i64, scratch_operands = 0 : i64, tpu.core_type = #tpu.core_type<tc>, window_params = [{transform_indices = @transform_0, window_bounds = array<i64: 128, 768>}, {pipeline_mode = #tpu.pipeline_mode<synchronous>, transform_indices = @transform_1, window_bounds = array<i64: 768, 768>}, {pipeline_mode = #tpu.pipeline_mode<synchronous>, transform_indices = @transform_2, window_bounds = array<i64: 1, 768>}, {pipeline_mode = #tpu.pipeline_mode<synchronous>, transform_indices = @transform_3, window_bounds = array<i64: 1, 768>}, {pipeline_mode = #tpu.pipeline_mode<synchronous>, transform_indices = @transform_4, window_bounds = array<i64: 1, 1>}, {transform_indices = @transform_5, window_bounds = array<i64: 128, 1>}]} {
    %c0 = arith.constant 0 : index
    %c0_0 = arith.constant 0 : index
    %0 = vector.load %arg1[%c0, %c0_0] : memref<128x768xbf16, #tpu.memory_space<vmem>>, vector<128x768xbf16>
    %c0_1 = arith.constant 0 : index
    %c0_2 = arith.constant 0 : index
    %1 = vector.load %arg2[%c0_1, %c0_2] : memref<768x768xbf16, #tpu.memory_space<vmem>>, vector<768x768xbf16>
    %cst = arith.constant dense<0.000000e+00> : vector<128x768xf32>
    %2 = tpu.matmul %0, %1, %cst {dimension_numbers = #tpu.dot_dimension_numbers<[1], [0], [0], [1], [0, 0, 1, 1], [], []>} : vector<128x768xbf16>, vector<768x768xbf16>, vector<128x768xf32> -> vector<128x768xf32>
    %c0_3 = arith.constant 0 : index
    %c0_4 = arith.constant 0 : index
    %3 = vector.load %arg3[%c0_3, %c0_4] : memref<1x768xf32, #tpu.memory_space<vmem>>, vector<1x768xf32>
    %4 = vector.broadcast %3 : vector<1x768xf32> to vector<128x768xf32>
    %5 = arith.addf %2, %4 : vector<128x768xf32>
    %6 = math.tanh %5 : vector<128x768xf32>
    %c0_5 = arith.constant 0 : index
    %c0_6 = arith.constant 0 : index
    %7 = vector.load %arg4[%c0_5, %c0_6] : memref<1x768xf32, #tpu.memory_space<vmem>>, vector<1x768xf32>
    %8 = vector.broadcast %7 : vector<1x768xf32> to vector<128x768xf32>
    %9 = arith.mulf %6, %8 : vector<128x768xf32>
    %cst_7 = arith.constant dense<0.000000e+00> : vector<128xf32>
    %10 = vector.multi_reduction <add>, %9, %cst_7 [1] : vector<128x768xf32> to vector<128xf32>
    %11 = vector.shape_cast %10 : vector<128xf32> to vector<128x1xf32>
    %c0_8 = arith.constant 0 : index
    %c0_9 = arith.constant 0 : index
    %12 = vector.load %arg5[%c0_8, %c0_9] : memref<1x1xf32, #tpu.memory_space<vmem>>, vector<1x1xf32>
    %13 = vector.broadcast %12 : vector<1x1xf32> to vector<128x1xf32>
    %14 = arith.addf %11, %13 : vector<128x1xf32>
    %c0_10 = arith.constant 0 : index
    %c0_11 = arith.constant 0 : index
    %15 = vector.load %arg6[%c0_10, %c0_11] : memref<128x1xf32, #tpu.memory_space<vmem>>, vector<128x1xf32>
    tpu.vector_store %arg6[%c0_10, %c0_11], %14 {strides = array<i32>} : memref<128x1xf32, #tpu.memory_space<vmem>>, vector<128x1xf32>,
    return
  }
  func.func @transform_0(%arg0: i32) -> (i32, i32) {
    %c0_i32 = arith.constant 0 : i32
    %c0_i32_0 = arith.constant 0 : i32
    return %arg0, %c0_i32 : i32, i32
  }
  func.func @transform_1(%arg0: i32) -> (i32, i32) {
    %c0_i32 = arith.constant 0 : i32
    %c0_i32_0 = arith.constant 0 : i32
    %c0_i32_1 = arith.constant 0 : i32
    return %c0_i32, %c0_i32_0 : i32, i32
  }
  func.func @transform_2(%arg0: i32) -> (i32, i32) {
    %c0_i32 = arith.constant 0 : i32
    %c0_i32_0 = arith.constant 0 : i32
    %c0_i32_1 = arith.constant 0 : i32
    return %c0_i32, %c0_i32_0 : i32, i32
  }
  func.func @transform_3(%arg0: i32) -> (i32, i32) {
    %c0_i32 = arith.constant 0 : i32
    %c0_i32_0 = arith.constant 0 : i32
    %c0_i32_1 = arith.constant 0 : i32
    return %c0_i32, %c0_i32_0 : i32, i32
  }
  func.func @transform_4(%arg0: i32) -> (i32, i32) {
    %c0_i32 = arith.constant 0 : i32
    %c0_i32_0 = arith.constant 0 : i32
    %c0_i32_1 = arith.constant 0 : i32
    return %c0_i32, %c0_i32_0 : i32, i32
  }
  func.func @transform_5(%arg0: i32) -> (i32, i32) {
    %c0_i32 = arith.constant 0 : i32
    %c0_i32_0 = arith.constant 0 : i32
    return %arg0, %c0_i32 : i32, i32
  }
}

</mosaic_0001>

<bundles_post_ra>
// kernel: tpu_custom_call.1
= control target key start
LH: loop header
LB: loop body
LE: loop exit
PB: predicated region body
PF: predicated region fallthrough
CT: control target
= control target key end

     0   :  { %s5869_s0 = inlined_call_operand.hbm [shape: bf16[128,768], index: 0, kind: input, shape index: {}]   ;;  %s5870_s1 = inlined_call_operand.hbm [shape: bf16[768,768], index: 1, kind: input, shape index: {}]   ;;  %s5871_s2 = inlined_call_operand.hbm [shape: f32[1,768], index: 2, kind: input, shape index: {}]   ;;  %s5872_s3 = inlined_call_operand.hbm [shape: f32[1,768], index: 3, kind: input, shape index: {}]   ;;  %s5873_s4 = inlined_call_operand.<no memory space> [shape: f32[1,1], index: 4, kind: input, shape index: {}]   ;;  %s5874_s5 = inlined_call_operand.vmem [shape: f32[128,1], index: 5, kind: output, shape index: {}]  }
   0x1   :  { %v10_v0 = vstv %s5873_s4 }
   0x2   :  { %11 = vst [vmem:[#allocation2] sm:$0x1] %v10_v0 }
   0x3   :  { %12 = vsyncpa [#allocation4], 0 }
   0x4   :  { %13 = vsyncpa [#allocation6], 0 }
   0x5   :  { %14 = vsyncpa [#allocation9], 0  ;;  %s5013_s20 = smov [#allocation5]   ;;  %s5014_s22 = smov [#allocation3]  }
   0x6   :  { %s32_s21 = sshll.u32 %s5013_s20, 4  ;;  %s20_s23 = sshll.u32 %s5014_s22, 4  ;;  %s33_s21 = int_to_ptr.vmem [resolvable:$true] %s32_s21  ;;  %s5052_s23 = int_to_ptr.vmem [resolvable:$true] %s20_s23 }
   0x7   :  { %s4919_s26 = scalar_lea.hbm %s5870_s1, 36864 }
   0x8   :  { %p4920_p0 = scmp.ne.s32.totalorder %s5870_s1, %s4919_s26  ;;  %p4923_p1 = scmp.lt.u32.totalorder %s4919_s26, %s5870_s1 }
   0xa   :  { %p4925_p2 = pnand %p4923_p1, %p4920_p0 }
   0xc   :  { %4928 = shalt.err (!%p4925_p2)
}
   0xd   :  { %s4929_s30 = scalar_lea.vmem %s33_s21, 36864  ;;  %p4934_p4 = scmp.lt.s32.totalorder %s33_s21, %s33_s21 }
   0xe   :  { %p4930_p3 = scmp.ne.s32.totalorder %s33_s21, %s4929_s30  ;;  %p4935_p5 = scmp.lt.s32.totalorder %s4929_s30, %s4929_s30 }
  0x10   :  { %p4936_p6 = por %p4935_p5, %p4934_p4 }
  0x12   :  { %p4937_p7 = pnand %p4936_p6, %p4930_p3 }
  0x14   :  { %4940 = shalt.err (!%p4937_p7)
}
  0x15   :  { %s5015_s6 = smov 384   ;;  %s5016_s7 = smov 24  }
  0x16   :  { %38 = dma.hbm_to_vmem [thread:$0]  %s5870_s1, 36864, %s33_s21, [#allocation6], %s5015_s6, %s5015_s6, %s5016_s7  }
  0x17   :  { %s4941_s12 = scalar_lea.hbm %s5869_s0, 6144 }
  0x18   :  { %p4942_p8 = scmp.ne.s32.totalorder %s5869_s0, %s4941_s12  ;;  %p4945_p9 = scmp.lt.u32.totalorder %s4941_s12, %s5869_s0 }
  0x1a   :  { %p4947_p10 = pnand %p4945_p9, %p4942_p8 }
  0x1c   :  { %4950 = shalt.err (!%p4947_p10)
}
  0x1d   :  { %s4951_s17 = scalar_lea.vmem %s5052_s23, 6144  ;;  %p4956_p12 = scmp.lt.s32.totalorder %s5052_s23, %s5052_s23 }
  0x1e   :  { %p4952_p11 = scmp.ne.s32.totalorder %s5052_s23, %s4951_s17  ;;  %p4957_p13 = scmp.lt.s32.totalorder %s4951_s17, %s4951_s17 }
  0x20   :  { %p4958_p0 = por %p4957_p13, %p4956_p12 }
  0x22   :  { %p4959_p1 = pnand %p4958_p0, %p4952_p11 }
  0x24   :  { %4962 = shalt.err (!%p4959_p1)
}
  0x25   :  { %26 = dma.hbm_to_vmem [thread:$0]  %s5869_s0, 6144, %s5052_s23, [#allocation4], %s5015_s6, %s5015_s6, %s5016_s7  }
  0x26   :  { %s5017_s19 = smov [#allocation7]   ;;  %s5018_s21 = smov [#allocation8]  }
  0x27   :  { %s45_s20 = sshll.u32 %s5017_s19, 4  ;;  %s55_s22 = sshll.u32 %s5018_s21, 4  ;;  %s46_s20 = int_to_ptr.vmem [resolvable:$true] %s45_s20  ;;  %s56_s22 = int_to_ptr.vmem [resolvable:$true] %s55_s22 }
  0x28   :  { %s4963_s26 = scalar_lea.hbm %s5871_s2, 96 }
  0x29   :  { %p4964_p2 = scmp.ne.s32.totalorder %s5871_s2, %s4963_s26  ;;  %p4967_p3 = scmp.lt.u32.totalorder %s4963_s26, %s5871_s2 }
  0x2b   :  { %p4969_p4 = pnand %p4967_p3, %p4964_p2 }
  0x2d   :  { %4972 = shalt.err (!%p4969_p4)
}
  0x2e   :  { %s4973_s0 = scalar_lea.vmem %s46_s20, 96  ;;  %p4978_p6 = scmp.lt.s32.totalorder %s46_s20, %s46_s20 }
  0x2f   :  { %p4974_p5 = scmp.ne.s32.totalorder %s46_s20, %s4973_s0  ;;  %p4979_p7 = scmp.lt.s32.totalorder %s4973_s0, %s4973_s0 }
  0x31   :  { %p4980_p8 = por %p4979_p7, %p4978_p6 }
  0x33   :  { %p4981_p9 = pnand %p4980_p8, %p4974_p5 }
  0x35   :  { %4984 = shalt.err (!%p4981_p9)
}
  0x36   :  { %48 = dma.hbm_to_vmem [thread:$0]  %s5871_s2, 96, %s46_s20, [#allocation6]  }
  0x37   :  { %s4985_s8 = scalar_lea.hbm %s5872_s3, 96 }
  0x38   :  { %p4986_p10 = scmp.ne.s32.totalorder %s5872_s3, %s4985_s8  ;;  %p4989_p11 = scmp.lt.u32.totalorder %s4985_s8, %s5872_s3 }
  0x3a   :  { %p4991_p12 = pnand %p4989_p11, %p4986_p10 }
  0x3c   :  { %4994 = shalt.err (!%p4991_p12)
}
  0x3d   :  { %s4995_s13 = scalar_lea.vmem %s56_s22, 96  ;;  %p5000_p0 = scmp.lt.s32.totalorder %s56_s22, %s56_s22 }
  0x3e   :  { %p4996_p13 = scmp.ne.s32.totalorder %s56_s22, %s4995_s13  ;;  %p5001_p1 = scmp.lt.s32.totalorder %s4995_s13, %s4995_s13 }
  0x40   :  { %p5002_p2 = por %p5001_p1, %p5000_p0 }
  0x42   :  { %p5003_p3 = pnand %p5002_p2, %p4996_p13 }
  0x44   :  { %5006 = shalt.err (!%p5003_p3)
}
  0x45   :  { %58 = dma.hbm_to_vmem [thread:$0]  %s5872_s3, 96, %s56_s22, [#allocation9]  }
  0x46   :  { %5007 = dma.done.wait [#allocation4], 6144  }
  0x47   :  { %5008 = vsyncadd [#allocation4], 4294961152 }
  0x48   :  { %5009 = dma.done.wait [#allocation6], 36960  }
  0x49   :  { %5010 = vsyncadd [#allocation6], 4294930336 }
  0x4a   :  { %5011 = dma.done.wait [#allocation9], 96  }
  0x4b   :  { %5012 = vsyncadd [#allocation9], 4294967200  ;;  %v4184_v1 = vld [vmem:[#allocation5 + $0x4] ss:$24 sps:$4 sm:$0xff]   ;;  %v4188_v3 = vld [vmem:[#allocation5] ss:$24 sps:$4 sm:$0xff]  }
  0x4c   :  { %v4186_v2 = vld [vmem:[#allocation5 + $0x304] ss:$24 sps:$4 sm:$0xff]   ;;  %2121 = vmatprep.subr.bf16.mxu1 %v4184_v1  ;;  %v4189_v4 = vld [vmem:[#allocation5 + $0x300] ss:$24 sps:$4 sm:$0xff]   ;;  %v4190_v5 = vld [vmem:[#allocation5 + $0x34] ss:$24 sps:$4 sm:$0xff]  }
  0x4d   :  { %2234 = vmatprep.subr.bf16.mxu0 %v4186_v2  ;;  %2122 = vmatpush1.bf16.msra.mxu1 %v4188_v3  ;;  %v4192_v6 = vld [vmem:[#allocation5 + $0x334] ss:$24 sps:$4 sm:$0xff]   ;;  %v4194_v7 = vld [vmem:[#allocation5 + $0x30] ss:$24 sps:$4 sm:$0xff]   ;;  %v4196_v9 = vld [vmem:[#allocation5 + $0x64] ss:$24 sps:$4 sm:$0xff]  }
  0x4e   :  { %2235 = vmatpush1.bf16.msra.mxu0 %v4189_v4  ;;  %2123 = vmatprep.subr.bf16.mxu1 %v4190_v5  ;;  %v4195_v8 = vld [vmem:[#allocation5 + $0x330] ss:$24 sps:$4 sm:$0xff]   ;;  %v4198_v10 = vld [vmem:[#allocation5 + $0x364] ss:$24 sps:$4 sm:$0xff]   ;;  %v4200_v11 = vld [vmem:[#allocation5 + $0x60] ss:$24 sps:$4 sm:$0xff]  }
  0x4f   :  { %2236 = vmatprep.subr.bf16.mxu0 %v4192_v6  ;;  %v4201_v12 = vld [vmem:[#allocation5 + $0x360] ss:$24 sps:$4 sm:$0xff]   ;;  %v4202_v13 = vld [vmem:[#allocation5 + $0x94] ss:$24 sps:$4 sm:$0xff]   ;;  %v4206_v15 = vld [vmem:[#allocation5 + $0x90] ss:$24 sps:$4 sm:$0xff]  }
  0x50   :  { %v4204_v14 = vld [vmem:[#allocation5 + $0x394] ss:$24 sps:$4 sm:$0xff]   ;;  %v4207_v16 = vld [vmem:[#allocation5 + $0x390] ss:$24 sps:$4 sm:$0xff]   ;;  %v4208_v17 = vld [vmem:[#allocation5 + $0xc4] ss:$24 sps:$4 sm:$0xff]  }
  0x51   :  { %2124 = vmatpush1.bf16.msra.mxu1 %v4194_v7  ;;  %v4210_v18 = vld [vmem:[#allocation5 + $0x3c4] ss:$24 sps:$4 sm:$0xff]   ;;  %v4212_v19 = vld [vmem:[#allocation5 + $0xc0] ss:$24 sps:$4 sm:$0xff]   ;;  %v4214_v21 = vld [vmem:[#allocation5 + $0xf4] ss:$24 sps:$4 sm:$0xff]  }
  0x52   :  { %2237 = vmatpush1.bf16.msra.mxu0 %v4195_v8  ;;  %2125 = vmatprep.subr.bf16.mxu1 %v4196_v9  ;;  %v4213_v20 = vld [vmem:[#allocation5 + $0x3c0] ss:$24 sps:$4 sm:$0xff]   ;;  %v4216_v22 = vld [vmem:[#allocation5 + $0x3f4] ss:$24 sps:$4 sm:$0xff]   ;;  %v4218_v23 = vld [vmem:[#allocation5 + $0xf0] ss:$24 sps:$4 sm:$0xff]  }
  0x53   :  { %2238 = vmatprep.subr.bf16.mxu0 %v4198_v10  ;;  %v4219_v24 = vld [vmem:[#allocation5 + $0x3f0] ss:$24 sps:$4 sm:$0xff]   ;;  %v4220_v25 = vld [vmem:[#allocation5 + $0x124] ss:$24 sps:$4 sm:$0xff]   ;;  %v4224_v27 = vld [vmem:[#allocation5 + $0x120] ss:$24 sps:$4 sm:$0xff]  }
  0x54   :  { %v4222_v26 = vld [vmem:[#allocation5 + $0x424] ss:$24 sps:$4 sm:$0xff]   ;;  %v4225_v28 = vld [vmem:[#allocation5 + $0x420] ss:$24 sps:$4 sm:$0xff]   ;;  %v4226_v29 = vld [vmem:[#allocation5 + $0x154] ss:$24 sps:$4 sm:$0xff]  }
  0x55   :  { %2126 = vmatpush1.bf16.msra.mxu1 %v4200_v11  ;;  %v4228_v30 = vld [vmem:[#allocation5 + $0x454] ss:$24 sps:$4 sm:$0xff]   ;;  %v4230_v31 = vld [vmem:[#allocation5 + $0x150] ss:$24 sps:$4 sm:$0xff]   ;;  %v4232_v33 = vld [vmem:[#allocation5 + $0x184] ss:$24 sps:$4 sm:$0xff]  }
  0x56   :  { %2239 = vmatpush1.bf16.msra.mxu0 %v4201_v12  ;;  %2127 = vmatprep.subr.bf16.mxu1 %v4202_v13  ;;  %v4231_v32 = vld [vmem:[#allocation5 + $0x450] ss:$24 sps:$4 sm:$0xff]   ;;  %v4234_v34 = vld [vmem:[#allocation5 + $0x484] ss:$24 sps:$4 sm:$0xff]   ;;  %v4236_v35 = vld [vmem:[#allocation5 + $0x180] ss:$24 sps:$4 sm:$0xff]  }
  0x57   :  { %2240 = vmatprep.subr.bf16.mxu0 %v4204_v14  ;;  %v4237_v36 = vld [vmem:[#allocation5 + $0x480] ss:$24 sps:$4 sm:$0xff]   ;;  %v4238_v37 = vld [vmem:[#allocation5 + $0x1b4] ss:$24 sps:$4 sm:$0xff]   ;;  %v4242_v39 = vld [vmem:[#allocation5 + $0x1b0] ss:$24 sps:$4 sm:$0xff]  }
  0x58   :  { %v4240_v38 = vld [vmem:[#allocation5 + $0x4b4] ss:$24 sps:$4 sm:$0xff]   ;;  %v4243_v40 = vld [vmem:[#allocation5 + $0x4b0] ss:$24 sps:$4 sm:$0xff]   ;;  %v4244_v41 = vld [vmem:[#allocation5 + $0x1e4] ss:$24 sps:$4 sm:$0xff]  }
  0x59   :  { %2128 = vmatpush1.bf16.msra.mxu1 %v4206_v15  ;;  %v4246_v42 = vld [vmem:[#allocation5 + $0x4e4] ss:$24 sps:$4 sm:$0xff]   ;;  %v4248_v43 = vld [vmem:[#allocation5 + $0x1e0] ss:$24 sps:$4 sm:$0xff]   ;;  %v4250_v45 = vld [vmem:[#allocation5 + $0x214] ss:$24 sps:$4 sm:$0xff]  }
  0x5a   :  { %2241 = vmatpush1.bf16.msra.mxu0 %v4207_v16  ;;  %2129 = vmatprep.subr.bf16.mxu1 %v4208_v17  ;;  %v4249_v44 = vld [vmem:[#allocation5 + $0x4e0] ss:$24 sps:$4 sm:$0xff]   ;;  %v4252_v46 = vld [vmem:[#allocation5 + $0x514] ss:$24 sps:$4 sm:$0xff]   ;;  %v4254_v47 = vld [vmem:[#allocation5 + $0x210] ss:$24 sps:$4 sm:$0xff]  }
  0x5b   :  { %2242 = vmatprep.subr.bf16.mxu0 %v4210_v18  ;;  %v4255_v48 = vld [vmem:[#allocation5 + $0x510] ss:$24 sps:$4 sm:$0xff]   ;;  %v5107_v49 = vld [vmem:[#allocation3 + $0x4] ss:$24 sps:$4 sm:$0xff]   ;;  %v4260_v53 = vld [vmem:[#allocation5 + $0x240] ss:$24 sps:$4 sm:$0xff]  }
  0x5c   :  { %v4256_v50 = vld [vmem:[#allocation5 + $0x244] ss:$24 sps:$4 sm:$0xff]   ;;  %2153 = vmatprep.mubr.bf16.mxu1 %v5107_v49  ;;  %v4261_v54 = vld [vmem:[#allocation5 + $0x540] ss:$24 sps:$4 sm:$0xff]   ;;  %v4262_v55 = vld [vmem:[#allocation5 + $0x274] ss:$24 sps:$4 sm:$0xff]  }
  0x5d   :  { %2130 = vmatpush1.bf16.msra.mxu1 %v4212_v19  ;;  %v4282_v51 = vld [vmem:[#allocation3 + $0xc] ss:$24 sps:$4 sm:$0xff]   ;;  %v4266_v57 = vld [vmem:[#allocation5 + $0x270] ss:$24 sps:$4 sm:$0xff]   ;;  %v4272_v61 = vld [vmem:[#allocation5 + $0x2a0] ss:$24 sps:$4 sm:$0xff]  }
  0x5e   :  { %2243 = vmatpush1.bf16.msra.mxu0 %v4213_v20  ;;  %2131 = vmatprep.subr.bf16.mxu1 %v4214_v21  ;;  %v4258_v52 = vld [vmem:[#allocation5 + $0x544] ss:$24 sps:$4 sm:$0xff]   ;;  %v4264_v56 = vld [vmem:[#allocation5 + $0x574] ss:$24 sps:$4 sm:$0xff]   ;;  %v4267_v58 = vld [vmem:[#allocation5 + $0x570] ss:$24 sps:$4 sm:$0xff]  }
  0x5f   :  { %2244 = vmatprep.subr.bf16.mxu0 %v4216_v22  ;;  %2266 = vmatprep.mubr.bf16.mxu0 %v4282_v51  ;;  %v4268_v59 = vld [vmem:[#allocation5 + $0x2a4] ss:$24 sps:$4 sm:$0xff]   ;;  %v4273_v62 = vld [vmem:[#allocation5 + $0x5a0] ss:$24 sps:$4 sm:$0xff]   ;;  %v4274_v63 = vld [vmem:[#allocation5 + $0x2d4] ss:$24 sps:$4 sm:$0xff]  }
  0x60   :  { %v4270_v60 = vld [vmem:[#allocation5 + $0x5a4] ss:$24 sps:$4 sm:$0xff]   ;;  %v4276_v0 = vld [vmem:[#allocation5 + $0x5d4] ss:$24 sps:$4 sm:$0xff]   ;;  %v4278_v1 = vld [vmem:[#allocation5 + $0x2d0] ss:$24 sps:$4 sm:$0xff]  }
  0x61   :  { %2132 = vmatpush1.bf16.msra.mxu1 %v4218_v23  ;;  %v4279_v2 = vld [vmem:[#allocation5 + $0x5d0] ss:$24 sps:$4 sm:$0xff]   ;;  %v4288_v3 = vld [vmem:[#allocation5 + $0x604] ss:$24 sps:$4 sm:$0xff]   ;;  %v5110_v5 = vld [vmem:[#allocation3] ss:$24 sps:$4 sm:$0xff]  }
  0x62   :  { %2245 = vmatpush1.bf16.msra.mxu0 %v4219_v24  ;;  %2133 = vmatprep.subr.bf16.mxu1 %v4220_v25  ;;  %v4291_v4 = vld [vmem:[#allocation5 + $0xc] ss:$24 sps:$4 sm:$0xff]   ;;  %v4285_v6 = vld [vmem:[#allocation3 + $0x8] ss:$24 sps:$4 sm:$0xff]   ;;  %v4297_v10 = vld [vmem:[#allocation5 + $0x3c] ss:$24 sps:$4 sm:$0xff]  }
  0x63   :  { %2246 = vmatprep.subr.bf16.mxu0 %v4222_v26  ;;  %v4286_v7 = vld [vmem:[#allocation5 + $0x600] ss:$24 sps:$4 sm:$0xff]   ;;  %v4294_v9 = vld [vmem:[#allocation5 + $0x634] ss:$24 sps:$4 sm:$0xff]   ;;  %v4292_v13 = vld [vmem:[#allocation5 + $0x630] ss:$24 sps:$4 sm:$0xff]  }
  0x64   :  { %v4289_v8 = vld [vmem:[#allocation5 + $0x8] ss:$24 sps:$4 sm:$0xff]   ;;  %v5112_v11 = vld [vmem:[#allocation3 + $0x34] ss:$24 sps:$4 sm:$0xff]   ;;  %v4295_v14 = vld [vmem:[#allocation5 + $0x38] ss:$24 sps:$4 sm:$0xff]  }
  0x65   :  { %2134 = vmatpush1.bf16.msra.mxu1 %v4224_v27  ;;  %v4300_v12 = vld [vmem:[#allocation3 + $0x3c] ss:$24 sps:$4 sm:$0xff]   ;;  %v4309_v16 = vld [vmem:[#allocation5 + $0x6c] ss:$24 sps:$4 sm:$0xff]   ;;  %v5116_v17 = vld [vmem:[#allocation3 + $0x30] ss:$24 sps:$4 sm:$0xff]  }
  0x66   :  { %2247 = vmatpush1.bf16.msra.mxu0 %v4225_v28  ;;  %2135 = vmatprep.subr.bf16.mxu1 %v4226_v29  ;;  %v4306_v15 = vld [vmem:[#allocation5 + $0x664] ss:$24 sps:$4 sm:$0xff]   ;;  %v4303_v18 = vld [vmem:[#allocation3 + $0x38] ss:$24 sps:$4 sm:$0xff]   ;;  %v4307_v20 = vld [vmem:[#allocation5 + $0x68] ss:$24 sps:$4 sm:$0xff]  }
  0x67   :  { %2248 = vmatprep.subr.bf16.mxu0 %v4228_v30  ;;  %v4304_v19 = vld [vmem:[#allocation5 + $0x660] ss:$24 sps:$4 sm:$0xff]   ;;  %v4312_v21 = vld [vmem:[#allocation5 + $0x694] ss:$24 sps:$4 sm:$0xff]   ;;  %v5118_v23 = vld [vmem:[#allocation3 + $0x64] ss:$24 sps:$4 sm:$0xff]  }
  0x68   :  { %v4315_v22 = vld [vmem:[#allocation5 + $0x9c] ss:$24 sps:$4 sm:$0xff]   ;;  %v4318_v24 = vld [vmem:[#allocation3 + $0x6c] ss:$24 sps:$4 sm:$0xff]   ;;  %v4310_v25 = vld [vmem:[#allocation5 + $0x690] ss:$24 sps:$4 sm:$0xff]  }
  0x69   :  { %2136 = vmatpush1.bf16.msra.mxu1 %v4230_v31  ;;  %v4313_v26 = vld [vmem:[#allocation5 + $0x98] ss:$24 sps:$4 sm:$0xff]   ;;  %v4324_v27 = vld [vmem:[#allocation5 + $0x6c4] ss:$24 sps:$4 sm:$0xff]   ;;  %v4321_v30 = vld [vmem:[#allocation3 + $0x68] ss:$24 sps:$4 sm:$0xff]  }
  0x6a   :  { %2249 = vmatpush1.bf16.msra.mxu0 %v4231_v32  ;;  %2137 = vmatprep.subr.bf16.mxu1 %v4232_v33  ;;  %v4327_v28 = vld [vmem:[#allocation5 + $0xcc] ss:$24 sps:$4 sm:$0xff]   ;;  %v5122_v29 = vld [vmem:[#allocation3 + $0x60] ss:$24 sps:$4 sm:$0xff]   ;;  %vm3497_vm0 = vcmask 7168  }
  0x6b   :  { %2250 = vmatprep.subr.bf16.mxu0 %v4234_v34  ;;  %v4322_v31 = vld [vmem:[#allocation5 + $0x6c0] ss:$24 sps:$4 sm:$0xff]   ;;  %v4330_v33 = vld [vmem:[#allocation5 + $0x6f4] ss:$24 sps:$4 sm:$0xff]  }
  0x6c   :  { %v4325_v32 = vld [vmem:[#allocation5 + $0xc8] ss:$24 sps:$4 sm:$0xff]   ;;  %v4333_v34 = vld [vmem:[#allocation5 + $0xfc] ss:$24 sps:$4 sm:$0xff]   ;;  %v4349_v51 = vld [vmem:[#allocation5 + $0x158] ss:$24 sps:$4 sm:$0xff]  }
  0x6d   :  { %2138 = vmatpush1.bf16.msra.mxu1 %v4236_v35  ;;  %v5124_v35 = vld [vmem:[#allocation3 + $0x94] ss:$24 sps:$4 sm:$0xff]  }
  0x6e   :  { %2251 = vmatpush1.bf16.msra.mxu0 %v4237_v36  ;;  %2139 = vmatprep.subr.bf16.mxu1 %v4238_v37  ;;  %v4336_v36 = vld [vmem:[#allocation3 + $0x9c] ss:$24 sps:$4 sm:$0xff]   ;;  %v4328_v37 = vld [vmem:[#allocation5 + $0x6f0] ss:$24 sps:$4 sm:$0xff]  }
  0x6f   :  { %2252 = vmatprep.subr.bf16.mxu0 %v4240_v38  ;;  %v4331_v38 = vld [vmem:[#allocation5 + $0xf8] ss:$24 sps:$4 sm:$0xff]  }
  0x71   :  { %2140 = vmatpush1.bf16.msra.mxu1 %v4242_v39  ;;  %v4342_v39 = vld [vmem:[#allocation5 + $0x724] ss:$24 sps:$4 sm:$0xff]  }
  0x72   :  { %2253 = vmatpush1.bf16.msra.mxu0 %v4243_v40  ;;  %2141 = vmatprep.subr.bf16.mxu1 %v4244_v41  ;;  %v4345_v40 = vld [vmem:[#allocation5 + $0x12c] ss:$24 sps:$4 sm:$0xff]   ;;  %v5128_v41 = vld [vmem:[#allocation3 + $0x90] ss:$24 sps:$4 sm:$0xff]  }
  0x73   :  { %2254 = vmatprep.subr.bf16.mxu0 %v4246_v42  ;;  %v4339_v42 = vld [vmem:[#allocation3 + $0x98] ss:$24 sps:$4 sm:$0xff]  }
  0x75   :  { %2142 = vmatpush1.bf16.msra.mxu1 %v4248_v43  ;;  %v4340_v43 = vld [vmem:[#allocation5 + $0x720] ss:$24 sps:$4 sm:$0xff]  }
  0x76   :  { %2255 = vmatpush1.bf16.msra.mxu0 %v4249_v44  ;;  %2143 = vmatprep.subr.bf16.mxu1 %v4250_v45  ;;  %v4343_v44 = vld [vmem:[#allocation5 + $0x128] ss:$24 sps:$4 sm:$0xff]   ;;  %v4348_v45 = vld [vmem:[#allocation5 + $0x754] ss:$24 sps:$4 sm:$0xff]  }
  0x77   :  { %2256 = vmatprep.subr.bf16.mxu0 %v4252_v46  ;;  %v4351_v46 = vld [vmem:[#allocation5 + $0x15c] ss:$24 sps:$4 sm:$0xff]  }
  0x79   :  { %2144 = vmatpush1.bf16.msra.mxu1 %v4254_v47  ;;  %v5130_v47 = vld [vmem:[#allocation3 + $0xc4] ss:$24 sps:$4 sm:$0xff]  }
  0x7a   :  { %2257 = vmatpush1.bf16.msra.mxu0 %v4255_v48  ;;  %2145 = vmatprep.subr.bf16.mxu1 %v4256_v50  ;;  %v4354_v48 = vld [vmem:[#allocation3 + $0xcc] ss:$24 sps:$4 sm:$0xff]   ;;  %v4346_v50 = vld [vmem:[#allocation5 + $0x750] ss:$24 sps:$4 sm:$0xff]  }
  0x7b   :  { %2258 = vmatprep.subr.bf16.mxu0 %v4258_v52  ;;  %v4360_v52 = vld [vmem:[#allocation5 + $0x784] ss:$24 sps:$4 sm:$0xff]  }
  0x7d   :  { %2146 = vmatpush1.bf16.msra.mxu1 %v4260_v53  ;;  %v4363_v53 = vld [vmem:[#allocation5 + $0x18c] ss:$24 sps:$4 sm:$0xff]  }
  0x7e   :  { %2259 = vmatpush1.bf16.msra.mxu0 %v4261_v54  ;;  %2147 = vmatprep.subr.bf16.mxu1 %v4262_v55  ;;  %v5134_v54 = vld [vmem:[#allocation3 + $0xc0] ss:$24 sps:$4 sm:$0xff]  }
  0x7f   :  { %2260 = vmatprep.subr.bf16.mxu0 %v4264_v56  ;;  %v4357_v55 = vld [vmem:[#allocation3 + $0xc8] ss:$24 sps:$4 sm:$0xff]  }
  0x80   :  { %v4358_v56 = vld [vmem:[#allocation5 + $0x780] ss:$24 sps:$4 sm:$0xff]  }
  0x81   :  { %2148 = vmatpush1.bf16.msra.mxu1 %v4266_v57  ;;  %v4361_v57 = vld [vmem:[#allocation5 + $0x188] ss:$24 sps:$4 sm:$0xff]  }
  0x82   :  { %2261 = vmatpush1.bf16.msra.mxu0 %v4267_v58  ;;  %2149 = vmatprep.subr.bf16.mxu1 %v4268_v59  ;;  %v4366_v58 = vld [vmem:[#allocation5 + $0x7b4] ss:$24 sps:$4 sm:$0xff]  }
  0x83   :  { %2262 = vmatprep.subr.bf16.mxu0 %v4270_v60  ;;  %v4369_v59 = vld [vmem:[#allocation5 + $0x1bc] ss:$24 sps:$4 sm:$0xff]  }
  0x84   :  { %v5136_v60 = vld [vmem:[#allocation3 + $0xf4] ss:$24 sps:$4 sm:$0xff]  }
  0x85   :  { %2150 = vmatpush1.bf16.msra.mxu1 %v4272_v61  ;;  %v4372_v61 = vld [vmem:[#allocation3 + $0xfc] ss:$24 sps:$4 sm:$0xff]  }
  0x86   :  { %2263 = vmatpush1.bf16.msra.mxu0 %v4273_v62  ;;  %2151 = vmatprep.subr.bf16.mxu1 %v4274_v63  ;;  %v4364_v62 = vld [vmem:[#allocation5 + $0x7b0] ss:$24 sps:$4 sm:$0xff]  }
  0x87   :  { %2264 = vmatprep.subr.bf16.mxu0 %v4276_v0  ;;  %v4367_v63 = vld [vmem:[#allocation5 + $0x1b8] ss:$24 sps:$4 sm:$0xff]   ;;  %v4378_v0 = vld [vmem:[#allocation5 + $0x7e4] ss:$24 sps:$4 sm:$0xff]  }
  0x89   :  { %2152 = vmatpush1.bf16.msra.mxu1 %v4278_v1  ;;  %v4381_v1 = vld [vmem:[#allocation5 + $0x1ec] ss:$24 sps:$4 sm:$0xff]  }
  0x8a   :  { %2265 = vmatpush1.bf16.msra.mxu0 %v4279_v2  ;;  %2460 = vmatprep.subr.bf16.mxu1 %v4291_v4  ;;  %v5140_v2 = vld [vmem:[#allocation3 + $0xf0] ss:$24 sps:$4 sm:$0xff]   ;;  %v4376_v4 = vld [vmem:[#allocation5 + $0x7e0] ss:$24 sps:$4 sm:$0xff]  }
  0x8b   :  { %2347 = vmatprep.subr.bf16.mxu0 %v4288_v3  ;;  %v4375_v3 = vld [vmem:[#allocation3 + $0xf8] ss:$24 sps:$4 sm:$0xff]  }
  0x8c   :  { %2154 = vmatmul.mubr.bf16.vlgmr.msra.gmra.mrb[0].mxu1 %v5110_v5 }
  0x8d   :  { %2267 = vmatmul.mubr.bf16.vlgmr.msra.gmra.mrb[0].mxu0 %v4285_v6  ;;  %2461 = vmatpush1.bf16.msra.mxu1 %v4289_v8  ;;  %v4379_v6 = vld [vmem:[#allocation5 + $0x1e8] ss:$24 sps:$4 sm:$0xff]   ;;  %v4387_v8 = vld [vmem:[#allocation5 + $0x21c] ss:$24 sps:$4 sm:$0xff]  }
  0x8e   :  { %2348 = vmatpush1.bf16.msra.mxu0 %v4286_v7  ;;  %2462 = vmatprep.subr.bf16.mxu1 %v4297_v10  ;;  %v4384_v7 = vld [vmem:[#allocation5 + $0x814] ss:$24 sps:$4 sm:$0xff]  }
  0x8f   :  { %2349 = vmatprep.subr.bf16.mxu0 %v4294_v9  ;;  %2163 = vmatprep.mubr.bf16.mxu1 %v5112_v11  ;;  %v5142_v9 = vld [vmem:[#allocation3 + $0x124] ss:$24 sps:$4 sm:$0xff]  }
  0x90   :  { %2276 = vmatprep.mubr.bf16.mxu0 %v4300_v12  ;;  %v4390_v10 = vld [vmem:[#allocation3 + $0x12c] ss:$24 sps:$4 sm:$0xff]   ;;  %v4382_v12 = vld [vmem:[#allocation5 + $0x810] ss:$24 sps:$4 sm:$0xff]  }
  0x91   :  { %2463 = vmatpush1.bf16.msra.mxu1 %v4295_v14  ;;  %v4396_v14 = vld [vmem:[#allocation5 + $0x844] ss:$24 sps:$4 sm:$0xff]  }
  0x92   :  { %2350 = vmatpush1.bf16.msra.mxu0 %v4292_v13  ;;  %2464 = vmatprep.subr.bf16.mxu1 %v4309_v16  ;;  %v4385_v13 = vld [vmem:[#allocation5 + $0x218] ss:$24 sps:$4 sm:$0xff]  }
  0x93   :  { %2351 = vmatprep.subr.bf16.mxu0 %v4306_v15  ;;  %v4399_v15 = vld [vmem:[#allocation5 + $0x24c] ss:$24 sps:$4 sm:$0xff]   ;;  %v5146_v16 = vld [vmem:[#allocation3 + $0x120] ss:$24 sps:$4 sm:$0xff]  }
  0x94   :  { %2164 = vmatmul.mubr.bf16.gmra.mrb[4].mxu1 %v5116_v17 }
  0x95   :  { %2277 = vmatmul.mubr.bf16.gmra.mrb[4].mxu0 %v4303_v18  ;;  %2465 = vmatpush1.bf16.msra.mxu1 %v4307_v20  ;;  %v4393_v18 = vld [vmem:[#allocation3 + $0x128] ss:$24 sps:$4 sm:$0xff]  }
  0x96   :  { %2352 = vmatpush1.bf16.msra.mxu0 %v4304_v19  ;;  %2466 = vmatprep.subr.bf16.mxu1 %v4315_v22  ;;  %v4394_v19 = vld [vmem:[#allocation5 + $0x840] ss:$24 sps:$4 sm:$0xff]   ;;  %v4405_v22 = vld [vmem:[#allocation5 + $0x27c] ss:$24 sps:$4 sm:$0xff]  }
  0x97   :  { %2353 = vmatprep.subr.bf16.mxu0 %v4312_v21  ;;  %2173 = vmatprep.mubr.bf16.mxu1 %v5118_v23  ;;  %v4397_v20 = vld [vmem:[#allocation5 + $0x248] ss:$24 sps:$4 sm:$0xff]   ;;  %v4402_v21 = vld [vmem:[#allocation5 + $0x874] ss:$24 sps:$4 sm:$0xff]  }
  0x98   :  { %2286 = vmatprep.mubr.bf16.mxu0 %v4318_v24  ;;  %v5148_v24 = vld [vmem:[#allocation3 + $0x154] ss:$24 sps:$4 sm:$0xff]  }
  0x99   :  { %2467 = vmatpush1.bf16.msra.mxu1 %v4313_v26  ;;  %v4400_v26 = vld [vmem:[#allocation5 + $0x870] ss:$24 sps:$4 sm:$0xff]  }
  0x9a   :  { %2354 = vmatpush1.bf16.msra.mxu0 %v4310_v25  ;;  %2468 = vmatprep.subr.bf16.mxu1 %v4327_v28  ;;  %v4408_v25 = vld [vmem:[#allocation3 + $0x15c] ss:$24 sps:$4 sm:$0xff]  }
  0x9b   :  { %2355 = vmatprep.subr.bf16.mxu0 %v4324_v27  ;;  %v4403_v27 = vld [vmem:[#allocation5 + $0x278] ss:$24 sps:$4 sm:$0xff]   ;;  %v4414_v28 = vld [vmem:[#allocation5 + $0x8a4] ss:$24 sps:$4 sm:$0xff]  }
  0x9c   :  { %2174 = vmatmul.mubr.bf16.gmra.mrb[8].mxu1 %v5122_v29 }
  0x9d   :  { %2287 = vmatmul.mubr.bf16.gmra.mrb[8].mxu0 %v4321_v30  ;;  %2469 = vmatpush1.bf16.msra.mxu1 %v4325_v32  ;;  %v4417_v30 = vld [vmem:[#allocation5 + $0x2ac] ss:$24 sps:$4 sm:$0xff]   ;;  %v5154_v32 = vld [vmem:[#allocation3 + $0x158] ss:$24 sps:$4 sm:$0xff]  }
  0x9e   :  { %2356 = vmatpush1.bf16.msra.mxu0 %v4322_v31  ;;  %2470 = vmatprep.subr.bf16.mxu1 %v4333_v34  ;;  %v5152_v31 = vld [vmem:[#allocation3 + $0x150] ss:$24 sps:$4 sm:$0xff]  }
  0x9f   :  { %2357 = vmatprep.subr.bf16.mxu0 %v4330_v33  ;;  %2183 = vmatprep.mubr.bf16.mxu1 %v5124_v35  ;;  %v4412_v33 = vld [vmem:[#allocation5 + $0x8a0] ss:$24 sps:$4 sm:$0xff]  }
  0xa0   :  { %2296 = vmatprep.mubr.bf16.mxu0 %v4336_v36  ;;  %v4415_v34 = vld [vmem:[#allocation5 + $0x2a8] ss:$24 sps:$4 sm:$0xff]   ;;  %v4420_v36 = vld [vmem:[#allocation5 + $0x8d4] ss:$24 sps:$4 sm:$0xff]  }
  0xa1   :  { %2471 = vmatpush1.bf16.msra.mxu1 %v4331_v38  ;;  %v5156_v38 = vld [vmem:[#allocation3 + $0x14] ss:$24 sps:$4 sm:$0xff]  }
  0xa2   :  { %2358 = vmatpush1.bf16.msra.mxu0 %v4328_v37  ;;  %2472 = vmatprep.subr.bf16.mxu1 %v4345_v40  ;;  %v4423_v37 = vld [vmem:[#allocation5 + $0x2dc] ss:$24 sps:$4 sm:$0xff]   ;;  %v4421_v40 = vld [vmem:[#allocation5 + $0x2d8] ss:$24 sps:$4 sm:$0xff]  }
  0xa3   :  { %2359 = vmatprep.subr.bf16.mxu0 %v4342_v39  ;;  %v4418_v39 = vld [vmem:[#allocation5 + $0x8d0] ss:$24 sps:$4 sm:$0xff]  }
  0xa4   :  { %2184 = vmatmul.mubr.bf16.gmra.mrb[12].mxu1 %v5128_v41 }
  0xa5   :  { %2297 = vmatmul.mubr.bf16.gmra.mrb[12].mxu0 %v4339_v42  ;;  %2473 = vmatpush1.bf16.msra.mxu1 %v4343_v44  ;;  %v4429_v42 = vld [vmem:[#allocation5 + $0x30c] ss:$24 sps:$4 sm:$0xff]   ;;  %v5160_v44 = vld [vmem:[#allocation3 + $0x10] ss:$24 sps:$4 sm:$0xff]  }
  0xa6   :  { %2360 = vmatpush1.bf16.msra.mxu0 %v4340_v43  ;;  %2474 = vmatprep.subr.bf16.mxu1 %v4351_v46  ;;  %v4432_v43 = vld [vmem:[#allocation5 + $0x14] ss:$24 sps:$4 sm:$0xff]   ;;  %v4430_v46 = vld [vmem:[#allocation5 + $0x10] ss:$24 sps:$4 sm:$0xff]  }
  0xa7   :  { %2361 = vmatprep.subr.bf16.mxu0 %v4348_v45  ;;  %2193 = vmatprep.mubr.bf16.mxu1 %v5130_v47  ;;  %v4427_v45 = vld [vmem:[#allocation5 + $0x308] ss:$24 sps:$4 sm:$0xff]  }
  0xa8   :  { %2306 = vmatprep.mubr.bf16.mxu0 %v4354_v48  ;;  %v4435_v48 = vld [vmem:[#allocation5 + $0x33c] ss:$24 sps:$4 sm:$0xff]  }
  0xa9   :  { %2475 = vmatpush1.bf16.msra.mxu1 %v4349_v51  ;;  %v5164_v51 = vld [vmem:[#allocation3 + $0x44] ss:$24 sps:$4 sm:$0xff]  }
  0xaa   :  { %2362 = vmatpush1.bf16.msra.mxu0 %v4346_v50  ;;  %2476 = vmatprep.subr.bf16.mxu1 %v4363_v53  ;;  %v4438_v50 = vld [vmem:[#allocation5 + $0x44] ss:$24 sps:$4 sm:$0xff]   ;;  %v4436_v53 = vld [vmem:[#allocation5 + $0x40] ss:$24 sps:$4 sm:$0xff]  }
  0xab   :  { %2363 = vmatprep.subr.bf16.mxu0 %v4360_v52  ;;  %v4433_v52 = vld [vmem:[#allocation5 + $0x338] ss:$24 sps:$4 sm:$0xff]  }
  0xac   :  { %2194 = vmatmul.mubr.bf16.gmra.mrb[16].mxu1 %v5134_v54 }
  0xad   :  { %2307 = vmatmul.mubr.bf16.gmra.mrb[16].mxu0 %v4357_v55  ;;  %2477 = vmatpush1.bf16.msra.mxu1 %v4361_v57  ;;  %v4444_v55 = vld [vmem:[#allocation5 + $0x36c] ss:$24 sps:$4 sm:$0xff]   ;;  %v4442_v57 = vld [vmem:[#allocation5 + $0x368] ss:$24 sps:$4 sm:$0xff]  }
  0xae   :  { %2364 = vmatpush1.bf16.msra.mxu0 %v4358_v56  ;;  %2478 = vmatprep.subr.bf16.mxu1 %v4369_v59  ;;  %v5170_v56 = vld [vmem:[#allocation3 + $0x40] ss:$24 sps:$4 sm:$0xff]   ;;  %v4450_v59 = vld [vmem:[#allocation5 + $0x39c] ss:$24 sps:$4 sm:$0xff]  }
  0xaf   :  { %2365 = vmatprep.subr.bf16.mxu0 %v4366_v58  ;;  %2203 = vmatprep.mubr.bf16.mxu1 %v5136_v60  ;;  %v4445_v58 = vld [vmem:[#allocation5 + $0x70] ss:$24 sps:$4 sm:$0xff]  }
  0xb0   :  { %2316 = vmatprep.mubr.bf16.mxu0 %v4372_v61  ;;  %v5172_v61 = vld [vmem:[#allocation3 + $0x74] ss:$24 sps:$4 sm:$0xff]  }
  0xb1   :  { %2479 = vmatpush1.bf16.msra.mxu1 %v4367_v63  ;;  %v4451_v63 = vld [vmem:[#allocation5 + $0xa0] ss:$24 sps:$4 sm:$0xff]  }
  0xb2   :  { %2366 = vmatpush1.bf16.msra.mxu0 %v4364_v62  ;;  %2480 = vmatprep.subr.bf16.mxu1 %v4381_v1  ;;  %v4448_v62 = vld [vmem:[#allocation5 + $0x398] ss:$24 sps:$4 sm:$0xff]  }
  0xb3   :  { %2367 = vmatprep.subr.bf16.mxu0 %v4378_v0  ;;  %v4462_v0 = vld [vmem:[#allocation5 + $0xd4] ss:$24 sps:$4 sm:$0xff]   ;;  %v5178_v1 = vld [vmem:[#allocation3 + $0x70] ss:$24 sps:$4 sm:$0xff]  }
  0xb4   :  { %2204 = vmatmul.mubr.bf16.gmra.mrb[20].mxu1 %v5140_v2 }
  0xb5   :  { %2317 = vmatmul.mubr.bf16.gmra.mrb[20].mxu0 %v4375_v3  ;;  %2481 = vmatpush1.bf16.msra.mxu1 %v4379_v6  ;;  %v4457_v3 = vld [vmem:[#allocation5 + $0x3c8] ss:$24 sps:$4 sm:$0xff]   ;;  %v4465_v6 = vld [vmem:[#allocation5 + $0x3fc] ss:$24 sps:$4 sm:$0xff]  }
  0xb6   :  { %2368 = vmatpush1.bf16.msra.mxu0 %v4376_v4  ;;  %2482 = vmatprep.subr.bf16.mxu1 %v4387_v8  ;;  %v4460_v4 = vld [vmem:[#allocation5 + $0xd0] ss:$24 sps:$4 sm:$0xff]  }
  0xb7   :  { %2369 = vmatprep.subr.bf16.mxu0 %v4384_v7  ;;  %2213 = vmatprep.mubr.bf16.mxu1 %v5142_v9  ;;  %v5180_v7 = vld [vmem:[#allocation3 + $0xa4] ss:$24 sps:$4 sm:$0xff]   ;;  %v4463_v8 = vld [vmem:[#allocation5 + $0x3f8] ss:$24 sps:$4 sm:$0xff]  }
  0xb8   :  { %2326 = vmatprep.mubr.bf16.mxu0 %v4390_v10  ;;  %v4466_v10 = vld [vmem:[#allocation5 + $0x100] ss:$24 sps:$4 sm:$0xff]  }
  0xb9   :  { %2483 = vmatpush1.bf16.msra.mxu1 %v4385_v13  ;;  %v5186_v13 = vld [vmem:[#allocation3 + $0xa0] ss:$24 sps:$4 sm:$0xff]  }
  0xba   :  { %2370 = vmatpush1.bf16.msra.mxu0 %v4382_v12  ;;  %2484 = vmatprep.subr.bf16.mxu1 %v4399_v15  ;;  %v4477_v12 = vld [vmem:[#allocation5 + $0x134] ss:$24 sps:$4 sm:$0xff]   ;;  %v4475_v15 = vld [vmem:[#allocation5 + $0x130] ss:$24 sps:$4 sm:$0xff]  }
  0xbb   :  { %2371 = vmatprep.subr.bf16.mxu0 %v4396_v14  ;;  %v4472_v14 = vld [vmem:[#allocation5 + $0x428] ss:$24 sps:$4 sm:$0xff]  }
  0xbc   :  { %2214 = vmatmul.mubr.bf16.gmra.mrb[24].mxu1 %v5146_v16 }
  0xbd   :  { %2327 = vmatmul.mubr.bf16.gmra.mrb[24].mxu0 %v4393_v18  ;;  %2485 = vmatpush1.bf16.msra.mxu1 %v4397_v20  ;;  %v4480_v18 = vld [vmem:[#allocation5 + $0x45c] ss:$24 sps:$4 sm:$0xff]   ;;  %v4478_v20 = vld [vmem:[#allocation5 + $0x458] ss:$24 sps:$4 sm:$0xff]  }
  0xbe   :  { %2372 = vmatpush1.bf16.msra.mxu0 %v4394_v19  ;;  %2486 = vmatprep.subr.bf16.mxu1 %v4405_v22  ;;  %v5188_v19 = vld [vmem:[#allocation3 + $0xd4] ss:$24 sps:$4 sm:$0xff]  }
  0xbf   :  { %2373 = vmatprep.subr.bf16.mxu0 %v4402_v21  ;;  %2223 = vmatprep.mubr.bf16.mxu1 %v5148_v24  ;;  %v4481_v21 = vld [vmem:[#allocation5 + $0x160] ss:$24 sps:$4 sm:$0xff]   ;;  %v4492_v22 = vld [vmem:[#allocation5 + $0x194] ss:$24 sps:$4 sm:$0xff]  }
  0xc0   :  { %2336 = vmatprep.mubr.bf16.mxu0 %v4408_v25  ;;  %v5194_v25 = vld [vmem:[#allocation3 + $0xd0] ss:$24 sps:$4 sm:$0xff]  }
  0xc1   :  { %2487 = vmatpush1.bf16.msra.mxu1 %v4403_v27  ;;  %v4490_v27 = vld [vmem:[#allocation5 + $0x190] ss:$24 sps:$4 sm:$0xff]  }
  0xc2   :  { %2374 = vmatpush1.bf16.msra.mxu0 %v4400_v26  ;;  %2488 = vmatprep.subr.bf16.mxu1 %v4417_v30  ;;  %v4487_v26 = vld [vmem:[#allocation5 + $0x488] ss:$24 sps:$4 sm:$0xff]   ;;  %v5196_v30 = vld [vmem:[#allocation3 + $0x104] ss:$24 sps:$4 sm:$0xff]  }
  0xc3   :  { %2375 = vmatprep.subr.bf16.mxu0 %v4414_v28  ;;  %v4495_v28 = vld [vmem:[#allocation5 + $0x4bc] ss:$24 sps:$4 sm:$0xff]  }
  0xc4   :  { %2224 = vmatmul.mubr.bf16.gmra.mrb[28].mxu1 %v5152_v31 }
  0xc5   :  { %2337 = vmatmul.mubr.bf16.gmra.mrb[28].mxu0 %v5154_v32  ;;  %2489 = vmatpush1.bf16.msra.mxu1 %v4415_v34  ;;  %v4496_v34 = vld [vmem:[#allocation5 + $0x1c0] ss:$24 sps:$4 sm:$0xff]  }
  0xc6   :  { %2376 = vmatpush1.bf16.msra.mxu0 %v4412_v33  ;;  %2490 = vmatprep.subr.bf16.mxu1 %v4423_v37  ;;  %v4493_v33 = vld [vmem:[#allocation5 + $0x4b8] ss:$24 sps:$4 sm:$0xff]  }
  0xc7   :  { %2377 = vmatprep.subr.bf16.mxu0 %v4420_v36  ;;  %2379 = vmatprep.mubr.bf16.mxu0 %v5156_v38  ;;  %v4507_v36 = vld [vmem:[#allocation5 + $0x1f4] ss:$24 sps:$4 sm:$0xff]   ;;  %v5202_v37 = vld [vmem:[#allocation3 + $0x100] ss:$24 sps:$4 sm:$0xff]  }
  0xc8   :  { %2492 = vmatprep.mubr.bf16.mxu1 %v5107_v49  ;;  %v4447_v49 = vld [vmem:[#allocation5 + $0x74] ss:$24 sps:$4 sm:$0xff]  }
  0xc9   :  { %2491 = vmatpush1.bf16.msra.mxu1 %v4421_v40  ;;  %v4505_v40 = vld [vmem:[#allocation5 + $0x1f0] ss:$24 sps:$4 sm:$0xff]  }
  0xca   :  { %2378 = vmatpush1.bf16.msra.mxu0 %v4418_v39  ;;  %2573 = vmatprep.subr.bf16.mxu1 %v4429_v42  ;;  %v4502_v39 = vld [vmem:[#allocation5 + $0x4e8] ss:$24 sps:$4 sm:$0xff]   ;;  %v4510_v42 = vld [vmem:[#allocation5 + $0x51c] ss:$24 sps:$4 sm:$0xff]  }
  0xcb   :  { %2799 = vmatprep.subr.bf16.mxu0 %v4432_v43  ;;  %v5204_v43 = vld [vmem:[#allocation3 + $0x134] ss:$24 sps:$4 sm:$0xff]  }
  0xcc   :  { %2493 = vmatmul.mubr.bf16.vlgmr.msra.gmra.mrb[32].mxu1 %v5110_v5  ;;  %v4453_v5 = vld [vmem:[#allocation5 + $0xa4] ss:$24 sps:$4 sm:$0xff]  }
  0xcd   :  { %2380 = vmatmul.mubr.bf16.vlgmr.msra.gmra.mrb[0].mxu0 %v5160_v44  ;;  %2574 = vmatpush1.bf16.msra.mxu1 %v4427_v45  ;;  %v4508_v45 = vld [vmem:[#allocation5 + $0x518] ss:$24 sps:$4 sm:$0xff]  }
  0xce   :  { %2800 = vmatpush1.bf16.msra.mxu0 %v4430_v46  ;;  %2575 = vmatprep.subr.bf16.mxu1 %v4435_v48  ;;  %v4511_v46 = vld [vmem:[#allocation5 + $0x220] ss:$24 sps:$4 sm:$0xff]   ;;  %v4522_v48 = vld [vmem:[#allocation5 + $0x254] ss:$24 sps:$4 sm:$0xff]  }
  0xcf   :  { %2801 = vmatprep.subr.bf16.mxu0 %v4438_v50  ;;  %2389 = vmatprep.mubr.bf16.mxu0 %v5164_v51  ;;  %v5210_v50 = vld [vmem:[#allocation3 + $0x130] ss:$24 sps:$4 sm:$0xff]  }
  0xd0   :  { %2502 = vmatprep.mubr.bf16.mxu1 %v5112_v11  ;;  %v4459_v11 = vld [vmem:[#allocation5 + $0x3cc] ss:$24 sps:$4 sm:$0xff]  }
  0xd1   :  { %2576 = vmatpush1.bf16.msra.mxu1 %v4433_v52  ;;  %v4517_v52 = vld [vmem:[#allocation5 + $0x548] ss:$24 sps:$4 sm:$0xff]  }
  0xd2   :  { %2802 = vmatpush1.bf16.msra.mxu0 %v4436_v53  ;;  %2577 = vmatprep.subr.bf16.mxu1 %v4444_v55  ;;  %v4520_v53 = vld [vmem:[#allocation5 + $0x250] ss:$24 sps:$4 sm:$0xff]   ;;  %v4525_v55 = vld [vmem:[#allocation5 + $0x57c] ss:$24 sps:$4 sm:$0xff]  }
  0xd3   :  { %2803 = vmatprep.subr.bf16.mxu0 %v4447_v49  ;;  %v5212_v49 = vld [vmem:[#allocation3 + $0x164] ss:$24 sps:$4 sm:$0xff]  }
  0xd4   :  { %2503 = vmatmul.mubr.bf16.gmra.mrb[36].mxu1 %v5116_v17  ;;  %v4468_v17 = vld [vmem:[#allocation5 + $0x104] ss:$24 sps:$4 sm:$0xff]  }
  0xd5   :  { %2390 = vmatmul.mubr.bf16.gmra.mrb[4].mxu0 %v5170_v56  ;;  %2578 = vmatpush1.bf16.msra.mxu1 %v4442_v57  ;;  %v4523_v57 = vld [vmem:[#allocation5 + $0x578] ss:$24 sps:$4 sm:$0xff]  }
  0xd6   :  { %2804 = vmatpush1.bf16.msra.mxu0 %v4445_v58  ;;  %2579 = vmatprep.subr.bf16.mxu1 %v4450_v59  ;;  %v4526_v58 = vld [vmem:[#allocation5 + $0x280] ss:$24 sps:$4 sm:$0xff]   ;;  %v4537_v59 = vld [vmem:[#allocation5 + $0x2b4] ss:$24 sps:$4 sm:$0xff]  }
  0xd7   :  { %2805 = vmatprep.subr.bf16.mxu0 %v4453_v5  ;;  %2399 = vmatprep.mubr.bf16.mxu0 %v5172_v61  ;;  %v5218_v5 = vld [vmem:[#allocation3 + $0x160] ss:$24 sps:$4 sm:$0xff]  }
  0xd8   :  { %2512 = vmatprep.mubr.bf16.mxu1 %v5118_v23  ;;  %v4474_v23 = vld [vmem:[#allocation5 + $0x42c] ss:$24 sps:$4 sm:$0xff]  }
  0xd9   :  { %2580 = vmatpush1.bf16.msra.mxu1 %v4448_v62  ;;  %v4532_v62 = vld [vmem:[#allocation5 + $0x5a8] ss:$24 sps:$4 sm:$0xff]  }
  0xda   :  { %2806 = vmatpush1.bf16.msra.mxu0 %v4451_v63  ;;  %2581 = vmatprep.subr.bf16.mxu1 %v4459_v11  ;;  %v4535_v63 = vld [vmem:[#allocation5 + $0x2b0] ss:$24 sps:$4 sm:$0xff]   ;;  %v4540_v11 = vld [vmem:[#allocation5 + $0x5dc] ss:$24 sps:$4 sm:$0xff]  }
  0xdb   :  { %2807 = vmatprep.subr.bf16.mxu0 %v4462_v0  ;;  %v4538_v0 = vld [vmem:[#allocation5 + $0x5d8] ss:$24 sps:$4 sm:$0xff]  }
  0xdc   :  { %2513 = vmatmul.mubr.bf16.gmra.mrb[40].mxu1 %v5122_v29  ;;  %v4483_v29 = vld [vmem:[#allocation5 + $0x164] ss:$24 sps:$4 sm:$0xff]  }
  0xdd   :  { %2400 = vmatmul.mubr.bf16.gmra.mrb[8].mxu0 %v5178_v1  ;;  %2582 = vmatpush1.bf16.msra.mxu1 %v4457_v3  ;;  %v4541_v3 = vld [vmem:[#allocation5 + $0x2e0] ss:$24 sps:$4 sm:$0xff]  }
  0xde   :  { %2808 = vmatpush1.bf16.msra.mxu0 %v4460_v4  ;;  %2583 = vmatprep.subr.bf16.mxu1 %v4465_v6  ;;  %v4546_v4 = vld [vmem:[#allocation5 + $0x60c] ss:$24 sps:$4 sm:$0xff]  }
  0xdf   :  { %2809 = vmatprep.subr.bf16.mxu0 %v4468_v17  ;;  %2409 = vmatprep.mubr.bf16.mxu0 %v5180_v7  ;;  %v5222_v6 = vld [vmem:[#allocation3 + $0xc] ss:$24 sps:$4 sm:$0xff]  }
  0xe0   :  { %2522 = vmatprep.mubr.bf16.mxu1 %v5124_v35  ;;  %v4489_v35 = vld [vmem:[#allocation5 + $0x48c] ss:$24 sps:$4 sm:$0xff]  }
  0xe1   :  { %2584 = vmatpush1.bf16.msra.mxu1 %v4463_v8  ;;  %v4881_v17 = vld [vmem:[#allocation3 + $0x4] ss:$24 sps:$4 sm:$0xff]   ;;  %v4544_v8 = vld [vmem:[#allocation5 + $0x608] ss:$24 sps:$4 sm:$0xff]  }
  0xe2   :  { %2810 = vmatpush1.bf16.msra.mxu0 %v4466_v10  ;;  %2585 = vmatprep.subr.bf16.mxu1 %v4474_v23  ;;  %v4547_v10 = vld [vmem:[#allocation5 + $0x310] ss:$24 sps:$4 sm:$0xff]   ;;  %v4552_v23 = vld [vmem:[#allocation5 + $0x63c] ss:$24 sps:$4 sm:$0xff]  }
  0xe3   :  { %2811 = vmatprep.subr.bf16.mxu0 %v4477_v12  ;;  %v4555_v12 = vld [vmem:[#allocation5 + $0x344] ss:$24 sps:$4 sm:$0xff]  }
  0xe4   :  { %2523 = vmatmul.mubr.bf16.gmra.mrb[44].mxu1 %v5128_v41  ;;  %v4498_v41 = vld [vmem:[#allocation5 + $0x1c4] ss:$24 sps:$4 sm:$0xff]  }
  0xe5   :  { %2410 = vmatmul.mubr.bf16.gmra.mrb[12].mxu0 %v5186_v13  ;;  %2586 = vmatpush1.bf16.msra.mxu1 %v4472_v14  ;;  %v5225_v14 = vld [vmem:[#allocation3 + $0x8] ss:$24 sps:$4 sm:$0xff]  }
  0xe6   :  { %2812 = vmatpush1.bf16.msra.mxu0 %v4475_v15  ;;  %2587 = vmatprep.subr.bf16.mxu1 %v4480_v18  ;;  %v4883_v15 = vld [vmem:[#allocation3] ss:$24 sps:$4 sm:$0xff]  }
  0xe7   :  { %2813 = vmatprep.subr.bf16.mxu0 %v4483_v29  ;;  %2419 = vmatprep.mubr.bf16.mxu0 %v5188_v19  ;;  %v4550_v18 = vld [vmem:[#allocation5 + $0x638] ss:$24 sps:$4 sm:$0xff]  }
  0xe8   :  { %2532 = vmatprep.mubr.bf16.mxu1 %v5130_v47  ;;  %v4504_v47 = vld [vmem:[#allocation5 + $0x4ec] ss:$24 sps:$4 sm:$0xff]   ;;  %v4553_v29 = vld [vmem:[#allocation5 + $0x340] ss:$24 sps:$4 sm:$0xff]  }
  0xe9   :  { %2588 = vmatpush1.bf16.msra.mxu1 %v4478_v20  ;;  %v4558_v20 = vld [vmem:[#allocation5 + $0x66c] ss:$24 sps:$4 sm:$0xff]  }
  0xea   :  { %2814 = vmatpush1.bf16.msra.mxu0 %v4481_v21  ;;  %2589 = vmatprep.subr.bf16.mxu1 %v4489_v35  ;;  %v4561_v21 = vld [vmem:[#allocation5 + $0x374] ss:$24 sps:$4 sm:$0xff]  }
  0xeb   :  { %2815 = vmatprep.subr.bf16.mxu0 %v4492_v22  ;;  %v5228_v35 = vld [vmem:[#allocation3 + $0x3c] ss:$24 sps:$4 sm:$0xff]  }
  0xec   :  { %2533 = vmatmul.mubr.bf16.gmra.mrb[48].mxu1 %v5134_v54  ;;  %v4513_v54 = vld [vmem:[#allocation5 + $0x224] ss:$24 sps:$4 sm:$0xff]   ;;  %v4885_v22 = vld [vmem:[#allocation3 + $0x34] ss:$24 sps:$4 sm:$0xff]  }
  0xed   :  { %2420 = vmatmul.mubr.bf16.gmra.mrb[16].mxu0 %v5194_v25  ;;  %2590 = vmatpush1.bf16.msra.mxu1 %v4487_v26  ;;  %v4556_v26 = vld [vmem:[#allocation5 + $0x668] ss:$24 sps:$4 sm:$0xff]  }
  0xee   :  { %2816 = vmatpush1.bf16.msra.mxu0 %v4490_v27  ;;  %2591 = vmatprep.subr.bf16.mxu1 %v4495_v28  ;;  %v4559_v27 = vld [vmem:[#allocation5 + $0x370] ss:$24 sps:$4 sm:$0xff]   ;;  %v4564_v28 = vld [vmem:[#allocation5 + $0x69c] ss:$24 sps:$4 sm:$0xff]  }
  0xef   :  { %2817 = vmatprep.subr.bf16.mxu0 %v4498_v41  ;;  %2429 = vmatprep.mubr.bf16.mxu0 %v5196_v30  ;;  %v4567_v41 = vld [vmem:[#allocation5 + $0x3a4] ss:$24 sps:$4 sm:$0xff]  }
  0xf0   :  { %2542 = vmatprep.mubr.bf16.mxu1 %v5136_v60  ;;  %v4519_v60 = vld [vmem:[#allocation5 + $0x54c] ss:$24 sps:$4 sm:$0xff]  }
  0xf1   :  { %2592 = vmatpush1.bf16.msra.mxu1 %v4493_v33  ;;  %v5231_v33 = vld [vmem:[#allocation3 + $0x38] ss:$24 sps:$4 sm:$0xff]  }
  0xf2   :  { %2818 = vmatpush1.bf16.msra.mxu0 %v4496_v34  ;;  %2593 = vmatprep.subr.bf16.mxu1 %v4504_v47  ;;  %v4887_v34 = vld [vmem:[#allocation3 + $0x30] ss:$24 sps:$4 sm:$0xff]  }
  0xf3   :  { %2819 = vmatprep.subr.bf16.mxu0 %v4507_v36  ;;  %v4562_v47 = vld [vmem:[#allocation5 + $0x698] ss:$24 sps:$4 sm:$0xff]  }
  0xf4   :  { %2543 = vmatmul.mubr.bf16.gmra.mrb[52].mxu1 %v5140_v2  ;;  %v4528_v2 = vld [vmem:[#allocation5 + $0x284] ss:$24 sps:$4 sm:$0xff]   ;;  %v4565_v36 = vld [vmem:[#allocation5 + $0x3a0] ss:$24 sps:$4 sm:$0xff]  }
  0xf5   :  { %2430 = vmatmul.mubr.bf16.gmra.mrb[20].mxu0 %v5202_v37  ;;  %2594 = vmatpush1.bf16.msra.mxu1 %v4502_v39  ;;  %v4570_v39 = vld [vmem:[#allocation5 + $0x6cc] ss:$24 sps:$4 sm:$0xff]  }
  0xf6   :  { %2820 = vmatpush1.bf16.msra.mxu0 %v4505_v40  ;;  %2595 = vmatprep.subr.bf16.mxu1 %v4510_v42  ;;  %v4573_v40 = vld [vmem:[#allocation5 + $0x3d4] ss:$24 sps:$4 sm:$0xff]  }
  0xf7   :  { %2821 = vmatprep.subr.bf16.mxu0 %v4513_v54  ;;  %2439 = vmatprep.mubr.bf16.mxu0 %v5204_v43  ;;  %v5234_v42 = vld [vmem:[#allocation3 + $0x6c] ss:$24 sps:$4 sm:$0xff]  }
  0xf8   :  { %2552 = vmatprep.mubr.bf16.mxu1 %v5142_v9  ;;  %v4534_v9 = vld [vmem:[#allocation5 + $0x5ac] ss:$24 sps:$4 sm:$0xff]  }
  0xf9   :  { %2596 = vmatpush1.bf16.msra.mxu1 %v4508_v45  ;;  %v4889_v54 = vld [vmem:[#allocation3 + $0x64] ss:$24 sps:$4 sm:$0xff]   ;;  %v4568_v45 = vld [vmem:[#allocation5 + $0x6c8] ss:$24 sps:$4 sm:$0xff]  }
  0xfa   :  { %2822 = vmatpush1.bf16.msra.mxu0 %v4511_v46  ;;  %2597 = vmatprep.subr.bf16.mxu1 %v4519_v60  ;;  %v4571_v46 = vld [vmem:[#allocation5 + $0x3d0] ss:$24 sps:$4 sm:$0xff]   ;;  %v4576_v60 = vld [vmem:[#allocation5 + $0x6fc] ss:$24 sps:$4 sm:$0xff]  }
  0xfb   :  { %2823 = vmatprep.subr.bf16.mxu0 %v4522_v48  ;;  %v4579_v48 = vld [vmem:[#allocation5 + $0x404] ss:$24 sps:$4 sm:$0xff]  }
  0xfc   :  { %2553 = vmatmul.mubr.bf16.gmra.mrb[56].mxu1 %v5146_v16  ;;  %v4543_v16 = vld [vmem:[#allocation5 + $0x2e4] ss:$24 sps:$4 sm:$0xff]  }
  0xfd   :  { %2440 = vmatmul.mubr.bf16.gmra.mrb[24].mxu0 %v5210_v50  ;;  %2598 = vmatpush1.bf16.msra.mxu1 %v4517_v52  ;;  %v5237_v52 = vld [vmem:[#allocation3 + $0x68] ss:$24 sps:$4 sm:$0xff]  }
  0xfe   :  { %2824 = vmatpush1.bf16.msra.mxu0 %v4520_v53  ;;  %2599 = vmatprep.subr.bf16.mxu1 %v4525_v55  ;;  %v4891_v53 = vld [vmem:[#allocation3 + $0x60] ss:$24 sps:$4 sm:$0xff]  }
  0xff   :  { %2825 = vmatprep.subr.bf16.mxu0 %v4528_v2  ;;  %2449 = vmatprep.mubr.bf16.mxu0 %v5212_v49  ;;  %v4574_v55 = vld [vmem:[#allocation5 + $0x6f8] ss:$24 sps:$4 sm:$0xff]  }
 0x100   :  { %2562 = vmatprep.mubr.bf16.mxu1 %v5148_v24  ;;  %v4549_v24 = vld [vmem:[#allocation5 + $0x314] ss:$24 sps:$4 sm:$0xff]   ;;  %v4577_v2 = vld [vmem:[#allocation5 + $0x400] ss:$24 sps:$4 sm:$0xff]  }
 0x101   :  { %2600 = vmatpush1.bf16.msra.mxu1 %v4523_v57  ;;  %v4582_v57 = vld [vmem:[#allocation5 + $0x72c] ss:$24 sps:$4 sm:$0xff]  }
 0x102   :  { %2826 = vmatpush1.bf16.msra.mxu0 %v4526_v58  ;;  %2601 = vmatprep.subr.bf16.mxu1 %v4534_v9  ;;  %v4585_v58 = vld [vmem:[#allocation5 + $0x434] ss:$24 sps:$4 sm:$0xff]  }
 0x103   :  { %2827 = vmatprep.subr.bf16.mxu0 %v4537_v59  ;;  %v5240_v9 = vld [vmem:[#allocation3 + $0x9c] ss:$24 sps:$4 sm:$0xff]  }
 0x104   :  { %2563 = vmatmul.mubr.bf16.gmra.mrb[60].mxu1 %v5152_v31  ;;  %v4893_v59 = vld [vmem:[#allocation3 + $0x94] ss:$24 sps:$4 sm:$0xff]  }
 0x105   :  { %2450 = vmatmul.mubr.bf16.gmra.mrb[28].mxu0 %v5218_v5  ;;  %2602 = vmatpush1.bf16.msra.mxu1 %v4532_v62  ;;  %v4580_v62 = vld [vmem:[#allocation5 + $0x728] ss:$24 sps:$4 sm:$0xff]  }
 0x106   :  { %2828 = vmatpush1.bf16.msra.mxu0 %v4535_v63  ;;  %2603 = vmatprep.subr.bf16.mxu1 %v4540_v11  ;;  %v4583_v63 = vld [vmem:[#allocation5 + $0x430] ss:$24 sps:$4 sm:$0xff]   ;;  %v4588_v11 = vld [vmem:[#allocation5 + $0x75c] ss:$24 sps:$4 sm:$0xff]  }
 0x107   :  { %2829 = vmatprep.subr.bf16.mxu0 %v4543_v16  ;;  %2605 = vmatprep.mubr.bf16.mxu1 %v5222_v6  ;;  %v4591_v16 = vld [vmem:[#allocation5 + $0x464] ss:$24 sps:$4 sm:$0xff]  }
 0x108   :  { %2831 = vmatprep.mubr.bf16.mxu0 %v4881_v17  ;;  %v4594_v17 = vld [vmem:[#allocation5 + $0x78c] ss:$24 sps:$4 sm:$0xff]  }
 0x109   :  { %2604 = vmatpush1.bf16.msra.mxu1 %v4538_v0  ;;  %v5243_v0 = vld [vmem:[#allocation3 + $0x98] ss:$24 sps:$4 sm:$0xff]  }
 0x10a   :  { %2830 = vmatpush1.bf16.msra.mxu0 %v4541_v3  ;;  %2686 = vmatprep.subr.bf16.mxu1 %v4546_v4  ;;  %v4895_v3 = vld [vmem:[#allocation3 + $0x90] ss:$24 sps:$4 sm:$0xff]  }
 0x10b   :  { %2912 = vmatprep.subr.bf16.mxu0 %v4549_v24  ;;  %v4586_v4 = vld [vmem:[#allocation5 + $0x758] ss:$24 sps:$4 sm:$0xff]  }
 0x10c   :  { %2606 = vmatmul.mubr.bf16.vlgmr.msra.gmra.mrb[32].mxu1 %v5225_v14  ;;  %v4589_v24 = vld [vmem:[#allocation5 + $0x460] ss:$24 sps:$4 sm:$0xff]  }
 0x10d   :  { %2832 = vmatmul.mubr.bf16.vlgmr.msra.gmra.mrb[32].mxu0 %v4883_v15  ;;  %2687 = vmatpush1.bf16.msra.mxu1 %v4544_v8  ;;  %v4597_v8 = vld [vmem:[#allocation5 + $0x494] ss:$24 sps:$4 sm:$0xff]   ;;  %v4595_v15 = vld [vmem:[#allocation5 + $0x490] ss:$24 sps:$4 sm:$0xff]  }
 0x10e   :  { %2913 = vmatpush1.bf16.msra.mxu0 %v4547_v10  ;;  %2688 = vmatprep.subr.bf16.mxu1 %v4552_v23  ;;  %v5246_v10 = vld [vmem:[#allocation3 + $0xcc] ss:$24 sps:$4 sm:$0xff]  }
 0x10f   :  { %2914 = vmatprep.subr.bf16.mxu0 %v4555_v12  ;;  %2615 = vmatprep.mubr.bf16.mxu1 %v5228_v35  ;;  %v4897_v23 = vld [vmem:[#allocation3 + $0xc4] ss:$24 sps:$4 sm:$0xff]   ;;  %v4592_v12 = vld [vmem:[#allocation5 + $0x788] ss:$24 sps:$4 sm:$0xff]  }
 0x110   :  { %2841 = vmatprep.mubr.bf16.mxu0 %v4885_v22  ;;  %v4598_v22 = vld [vmem:[#allocation5 + $0x7b8] ss:$24 sps:$4 sm:$0xff]  }
 0x111   :  { %2689 = vmatpush1.bf16.msra.mxu1 %v4550_v18  ;;  %v4600_v18 = vld [vmem:[#allocation5 + $0x7bc] ss:$24 sps:$4 sm:$0xff]  }
 0x112   :  { %2915 = vmatpush1.bf16.msra.mxu0 %v4553_v29  ;;  %2690 = vmatprep.subr.bf16.mxu1 %v4558_v20  ;;  %v4603_v29 = vld [vmem:[#allocation5 + $0x4c4] ss:$24 sps:$4 sm:$0xff]   ;;  %v5249_v20 = vld [vmem:[#allocation3 + $0xc8] ss:$24 sps:$4 sm:$0xff]  }
 0x113   :  { %2916 = vmatprep.subr.bf16.mxu0 %v4561_v21  ;;  %v4899_v21 = vld [vmem:[#allocation3 + $0xc0] ss:$24 sps:$4 sm:$0xff]  }
 0x114   :  { %2616 = vmatmul.mubr.bf16.gmra.mrb[36].mxu1 %v5231_v33 }
 0x115   :  { %2842 = vmatmul.mubr.bf16.gmra.mrb[36].mxu0 %v4887_v34  ;;  %2691 = vmatpush1.bf16.msra.mxu1 %v4556_v26  ;;  %v4601_v26 = vld [vmem:[#allocation5 + $0x4c0] ss:$24 sps:$4 sm:$0xff]   ;;  %v4901_v34 = vld [vmem:[#allocation3 + $0xf4] ss:$24 sps:$4 sm:$0xff]  }
 0x116   :  { %2917 = vmatpush1.bf16.msra.mxu0 %v4559_v27  ;;  %2692 = vmatprep.subr.bf16.mxu1 %v4564_v28  ;;  %v4606_v27 = vld [vmem:[#allocation5 + $0x7ec] ss:$24 sps:$4 sm:$0xff]  }
 0x117   :  { %2918 = vmatprep.subr.bf16.mxu0 %v4567_v41  ;;  %2625 = vmatprep.mubr.bf16.mxu1 %v5234_v42  ;;  %v4609_v28 = vld [vmem:[#allocation5 + $0x4f4] ss:$24 sps:$4 sm:$0xff]  }
 0x118   :  { %2851 = vmatprep.mubr.bf16.mxu0 %v4889_v54  ;;  %v5252_v41 = vld [vmem:[#allocation3 + $0xfc] ss:$24 sps:$4 sm:$0xff]   ;;  %v5255_v54 = vld [vmem:[#allocation3 + $0xf8] ss:$24 sps:$4 sm:$0xff]  }
 0x119   :  { %2693 = vmatpush1.bf16.msra.mxu1 %v4562_v47  ;;  %v4604_v47 = vld [vmem:[#allocation5 + $0x7e8] ss:$24 sps:$4 sm:$0xff]  }
 0x11a   :  { %2919 = vmatpush1.bf16.msra.mxu0 %v4565_v36  ;;  %2694 = vmatprep.subr.bf16.mxu1 %v4570_v39  ;;  %v4607_v36 = vld [vmem:[#allocation5 + $0x4f0] ss:$24 sps:$4 sm:$0xff]   ;;  %v4612_v39 = vld [vmem:[#allocation5 + $0x81c] ss:$24 sps:$4 sm:$0xff]  }
 0x11b   :  { %2920 = vmatprep.subr.bf16.mxu0 %v4573_v40  ;;  %v4615_v40 = vld [vmem:[#allocation5 + $0x524] ss:$24 sps:$4 sm:$0xff]  }
 0x11c   :  { %2626 = vmatmul.mubr.bf16.gmra.mrb[40].mxu1 %v5237_v52 }
 0x11d   :  { %2852 = vmatmul.mubr.bf16.gmra.mrb[40].mxu0 %v4891_v53  ;;  %2695 = vmatpush1.bf16.msra.mxu1 %v4568_v45  ;;  %v4903_v45 = vld [vmem:[#allocation3 + $0xf0] ss:$24 sps:$4 sm:$0xff]   ;;  %v4621_v53 = vld [vmem:[#allocation5 + $0x554] ss:$24 sps:$4 sm:$0xff]  }
 0x11e   :  { %2921 = vmatpush1.bf16.msra.mxu0 %v4571_v46  ;;  %2696 = vmatprep.subr.bf16.mxu1 %v4576_v60  ;;  %v4610_v46 = vld [vmem:[#allocation5 + $0x818] ss:$24 sps:$4 sm:$0xff]  }
 0x11f   :  { %2922 = vmatprep.subr.bf16.mxu0 %v4579_v48  ;;  %2635 = vmatprep.mubr.bf16.mxu1 %v5240_v9  ;;  %v4613_v60 = vld [vmem:[#allocation5 + $0x520] ss:$24 sps:$4 sm:$0xff]   ;;  %v4618_v48 = vld [vmem:[#allocation5 + $0x84c] ss:$24 sps:$4 sm:$0xff]  }
 0x120   :  { %2861 = vmatprep.mubr.bf16.mxu0 %v4893_v59  ;;  %v4624_v59 = vld [vmem:[#allocation5 + $0x87c] ss:$24 sps:$4 sm:$0xff]  }
 0x121   :  { %2697 = vmatpush1.bf16.msra.mxu1 %v4574_v55  ;;  %v5258_v55 = vld [vmem:[#allocation3 + $0x12c] ss:$24 sps:$4 sm:$0xff]  }
 0x122   :  { %2923 = vmatpush1.bf16.msra.mxu0 %v4577_v2  ;;  %2698 = vmatprep.subr.bf16.mxu1 %v4582_v57  ;;  %v4905_v2 = vld [vmem:[#allocation3 + $0x124] ss:$24 sps:$4 sm:$0xff]   ;;  %v4616_v57 = vld [vmem:[#allocation5 + $0x848] ss:$24 sps:$4 sm:$0xff]  }
 0x123   :  { %2924 = vmatprep.subr.bf16.mxu0 %v4585_v58  ;;  %v4619_v58 = vld [vmem:[#allocation5 + $0x550] ss:$24 sps:$4 sm:$0xff]  }
 0x124   :  { %2636 = vmatmul.mubr.bf16.gmra.mrb[44].mxu1 %v5243_v0 }
 0x125   :  { %2862 = vmatmul.mubr.bf16.gmra.mrb[44].mxu0 %v4895_v3  ;;  %2699 = vmatpush1.bf16.msra.mxu1 %v4580_v62  ;;  %v4627_v62 = vld [vmem:[#allocation5 + $0x584] ss:$24 sps:$4 sm:$0xff]   ;;  %v4625_v3 = vld [vmem:[#allocation5 + $0x580] ss:$24 sps:$4 sm:$0xff]  }
 0x126   :  { %2925 = vmatpush1.bf16.msra.mxu0 %v4583_v63  ;;  %2700 = vmatprep.subr.bf16.mxu1 %v4588_v11  ;;  %v5261_v63 = vld [vmem:[#allocation3 + $0x128] ss:$24 sps:$4 sm:$0xff]  }
 0x127   :  { %2926 = vmatprep.subr.bf16.mxu0 %v4591_v16  ;;  %2645 = vmatprep.mubr.bf16.mxu1 %v5246_v10  ;;  %v4907_v11 = vld [vmem:[#allocation3 + $0x120] ss:$24 sps:$4 sm:$0xff]  }
 0x128   :  { %2871 = vmatprep.mubr.bf16.mxu0 %v4897_v23  ;;  %v4622_v16 = vld [vmem:[#allocation5 + $0x878] ss:$24 sps:$4 sm:$0xff]   ;;  %v4628_v23 = vld [vmem:[#allocation5 + $0x8a8] ss:$24 sps:$4 sm:$0xff]  }
 0x129   :  { %2701 = vmatpush1.bf16.msra.mxu1 %v4586_v4  ;;  %v4630_v4 = vld [vmem:[#allocation5 + $0x8ac] ss:$24 sps:$4 sm:$0xff]  }
 0x12a   :  { %2927 = vmatpush1.bf16.msra.mxu0 %v4589_v24  ;;  %2702 = vmatprep.subr.bf16.mxu1 %v4594_v17  ;;  %v4633_v24 = vld [vmem:[#allocation5 + $0x5b4] ss:$24 sps:$4 sm:$0xff]  }
 0x12b   :  { %2928 = vmatprep.subr.bf16.mxu0 %v4597_v8  ;;  %v5264_v17 = vld [vmem:[#allocation3 + $0x15c] ss:$24 sps:$4 sm:$0xff]  }
 0x12c   :  { %2646 = vmatmul.mubr.bf16.gmra.mrb[48].mxu1 %v5249_v20  ;;  %v4909_v8 = vld [vmem:[#allocation3 + $0x154] ss:$24 sps:$4 sm:$0xff]  }
 0x12d   :  { %2872 = vmatmul.mubr.bf16.gmra.mrb[48].mxu0 %v4899_v21  ;;  %2703 = vmatpush1.bf16.msra.mxu1 %v4592_v12  ;;  %v4631_v12 = vld [vmem:[#allocation5 + $0x5b0] ss:$24 sps:$4 sm:$0xff]   ;;  %v4637_v21 = vld [vmem:[#allocation5 + $0x5e0] ss:$24 sps:$4 sm:$0xff]  }
 0x12e   :  { %2929 = vmatpush1.bf16.msra.mxu0 %v4595_v15  ;;  %2704 = vmatprep.subr.bf16.mxu1 %v4600_v18  ;;  %v4636_v15 = vld [vmem:[#allocation5 + $0x8dc] ss:$24 sps:$4 sm:$0xff]  }
 0x12f   :  { %2930 = vmatprep.subr.bf16.mxu0 %v4603_v29  ;;  %2655 = vmatprep.mubr.bf16.mxu1 %v5252_v41  ;;  %v4639_v18 = vld [vmem:[#allocation5 + $0x5e4] ss:$24 sps:$4 sm:$0xff]   ;;  %v4634_v29 = vld [vmem:[#allocation5 + $0x8d8] ss:$24 sps:$4 sm:$0xff]  }
 0x130   :  { %2881 = vmatprep.mubr.bf16.mxu0 %v4901_v34  ;;  %v4663_v34 = vld [vmem:[#allocation5 + $0x764] ss:$24 sps:$4 sm:$0xff]  }
 0x131   :  { %2705 = vmatpush1.bf16.msra.mxu1 %v4598_v22  ;;  %v4642_v22 = vld [vmem:[#allocation5 + $0x614] ss:$24 sps:$4 sm:$0xff]  }
 0x132   :  { %2931 = vmatpush1.bf16.msra.mxu0 %v4601_v26  ;;  %2706 = vmatprep.subr.bf16.mxu1 %v4606_v27  ;;  %v4640_v26 = vld [vmem:[#allocation5 + $0x610] ss:$24 sps:$4 sm:$0xff]   ;;  %v4645_v27 = vld [vmem:[#allocation5 + $0x644] ss:$24 sps:$4 sm:$0xff]  }
 0x133   :  { %2932 = vmatprep.subr.bf16.mxu0 %v4609_v28 }
 0x134   :  { %2656 = vmatmul.mubr.bf16.gmra.mrb[52].mxu1 %v5255_v54 }
 0x135   :  { %2882 = vmatmul.mubr.bf16.gmra.mrb[52].mxu0 %v4903_v45  ;;  %2707 = vmatpush1.bf16.msra.mxu1 %v4604_v47  ;;  %v4667_v45 = vld [vmem:[#allocation5 + $0x7c0] ss:$24 sps:$4 sm:$0xff]  }
 0x136   :  { %2933 = vmatpush1.bf16.msra.mxu0 %v4607_v36  ;;  %2708 = vmatprep.subr.bf16.mxu1 %v4612_v39 }
 0x137   :  { %2934 = vmatprep.subr.bf16.mxu0 %v4615_v40  ;;  %2665 = vmatprep.mubr.bf16.mxu1 %v5258_v55  ;;  %v4669_v40 = vld [vmem:[#allocation5 + $0x7c4] ss:$24 sps:$4 sm:$0xff]  }
 0x138   :  { %2891 = vmatprep.mubr.bf16.mxu0 %v4905_v2  ;;  %v4675_v2 = vld [vmem:[#allocation5 + $0x824] ss:$24 sps:$4 sm:$0xff]  }
 0x139   :  { %2709 = vmatpush1.bf16.msra.mxu1 %v4610_v46 }
 0x13a   :  { %2935 = vmatpush1.bf16.msra.mxu0 %v4613_v60  ;;  %2710 = vmatprep.subr.bf16.mxu1 %v4618_v48 }
 0x13b   :  { %2936 = vmatprep.subr.bf16.mxu0 %v4621_v53  ;;  %v4670_v53 = vld [vmem:[#allocation5 + $0x7f0] ss:$24 sps:$4 sm:$0xff]  }
 0x13c   :  { %2666 = vmatmul.mubr.bf16.gmra.mrb[56].mxu1 %v5261_v63 }
 0x13d   :  { %2892 = vmatmul.mubr.bf16.gmra.mrb[56].mxu0 %v4907_v11  ;;  %2711 = vmatpush1.bf16.msra.mxu1 %v4616_v57  ;;  %v4673_v57 = vld [vmem:[#allocation5 + $0x820] ss:$24 sps:$4 sm:$0xff]   ;;  %v4676_v11 = vld [vmem:[#allocation5 + $0x850] ss:$24 sps:$4 sm:$0xff]  }
 0x13e   :  { %2937 = vmatpush1.bf16.msra.mxu0 %v4619_v58  ;;  %2712 = vmatprep.subr.bf16.mxu1 %v4624_v59 }
 0x13f   :  { %2938 = vmatprep.subr.bf16.mxu0 %v4627_v62  ;;  %2675 = vmatprep.mubr.bf16.mxu1 %v5264_v17 }
 0x140   :  { %2901 = vmatprep.mubr.bf16.mxu0 %v4909_v8 }
 0x141   :  { %2713 = vmatpush1.bf16.msra.mxu1 %v4622_v16  ;;  %v4681_v16 = vld [vmem:[#allocation5 + $0x884] ss:$24 sps:$4 sm:$0xff]  }
 0x142   :  { %2939 = vmatpush1.bf16.msra.mxu0 %v4625_v3  ;;  %2714 = vmatprep.subr.bf16.mxu1 %v4630_v4  ;;  %v4679_v3 = vld [vmem:[#allocation5 + $0x880] ss:$24 sps:$4 sm:$0xff]  }
 0x143   :  { %2940 = vmatprep.subr.bf16.mxu0 %v4633_v24 }
 0x144   :  { %2676 = vmatmul.mubr.bf16.gmra.mrb[60].mxu1 %v5154_v32  ;;  %v4648_v32 = vld [vmem:[#allocation5 + $0x674] ss:$24 sps:$4 sm:$0xff]  }
 0x145   :  { %2902 = vmatmul.mubr.bf16.gmra.mrb[60].mxu0 %v5152_v31  ;;  %2715 = vmatpush1.bf16.msra.mxu1 %v4628_v23  ;;  %v4643_v31 = vld [vmem:[#allocation5 + $0x640] ss:$24 sps:$4 sm:$0xff]   ;;  %v4682_v23 = vld [vmem:[#allocation5 + $0x8b0] ss:$24 sps:$4 sm:$0xff]  }
 0x146   :  { %2941 = vmatpush1.bf16.msra.mxu0 %v4631_v12  ;;  %2716 = vmatprep.subr.bf16.mxu1 %v4636_v15  ;;  %v4687_v12 = vld [vmem:[#allocation5 + $0x8e4] ss:$24 sps:$4 sm:$0xff]   ;;  %v4910_v15 = vld [vmem:[#allocation3 + $0x158] ss:$24 sps:$4 sm:$0xff]  }
 0x147   :  { %2942 = vmatprep.subr.bf16.mxu0 %v4639_v18  ;;  %2718 = vmatprep.mubr.bf16.mxu1 %v5156_v38  ;;  %v4646_v38 = vld [vmem:[#allocation5 + $0x670] ss:$24 sps:$4 sm:$0xff]   ;;  %v4685_v18 = vld [vmem:[#allocation5 + $0x8e0] ss:$24 sps:$4 sm:$0xff]  }
 0x148   :  { %2944 = vmatprep.mubr.bf16.mxu0 %v5222_v6  ;;  %v4651_v6 = vld [vmem:[#allocation5 + $0x6a4] ss:$24 sps:$4 sm:$0xff]  }
 0x149   :  { %2717 = vmatpush1.bf16.msra.mxu1 %v4634_v29  ;;  %v4911_v29 = vld [vmem:[#allocation3 + $0x14] ss:$24 sps:$4 sm:$0xff]  }
 0x14a   :  { %2943 = vmatpush1.bf16.msra.mxu0 %v4637_v21  ;;  %3858 = vmatprep.subr.bf16.mxu1 %v4642_v22 }
 0x14b   :  { %3025 = vmatprep.subr.bf16.mxu0 %v4642_v22 }
 0x14c   :  { %2719 = vmatmul.mubr.bf16.vlgmr.msra.gmra.mrb[32].mxu1 %v5160_v44  ;;  %v4649_v44 = vld [vmem:[#allocation5 + $0x6a0] ss:$24 sps:$4 sm:$0xff]  }
 0x14d   :  { %2945 = vmatmul.mubr.bf16.vlgmr.msra.gmra.mrb[32].mxu0 %v5225_v14  ;;  %3874 = vmatpush1.bf16.msra.mxu1 %v4640_v26  ;;  %v4654_v14 = vld [vmem:[#allocation5 + $0x6d4] ss:$24 sps:$4 sm:$0xff]  }
 0x14e   :  { %3026 = vmatpush1.bf16.msra.mxu0 %v4640_v26  ;;  %3859 = vmatprep.subr.bf16.mxu1 %v4645_v27 }
 0x14f   :  { %3027 = vmatprep.subr.bf16.mxu0 %v4645_v27  ;;  %2728 = vmatprep.mubr.bf16.mxu1 %v5164_v51  ;;  %v4652_v51 = vld [vmem:[#allocation5 + $0x6d0] ss:$24 sps:$4 sm:$0xff]  }
 0x150   :  { %2954 = vmatprep.mubr.bf16.mxu0 %v5228_v35  ;;  %v4657_v35 = vld [vmem:[#allocation5 + $0x704] ss:$24 sps:$4 sm:$0xff]   ;;  %v4912_v27 = vld [vmem:[#allocation3 + $0x10] ss:$24 sps:$4 sm:$0xff]  }
 0x151   :  { %3875 = vmatpush1.bf16.msra.mxu1 %v4643_v31 }
 0x152   :  { %3028 = vmatpush1.bf16.msra.mxu0 %v4643_v31  ;;  %3860 = vmatprep.subr.bf16.mxu1 %v4648_v32  ;;  %v4913_v31 = vld [vmem:[#allocation3 + $0x44] ss:$24 sps:$4 sm:$0xff]  }
 0x153   :  { %3029 = vmatprep.subr.bf16.mxu0 %v4648_v32  ;;  %v411_v32 = vlaneseq }
 0x154   :  { %2729 = vmatmul.mubr.bf16.gmra.mrb[36].mxu1 %v5170_v56  ;;  %v4655_v56 = vld [vmem:[#allocation5 + $0x700] ss:$24 sps:$4 sm:$0xff]  }
 0x155   :  { %2955 = vmatmul.mubr.bf16.gmra.mrb[36].mxu0 %v5231_v33  ;;  %3876 = vmatpush1.bf16.msra.mxu1 %v4646_v38  ;;  %v4660_v33 = vld [vmem:[#allocation5 + $0x734] ss:$24 sps:$4 sm:$0xff]  }
 0x156   :  { %3030 = vmatpush1.bf16.msra.mxu0 %v4646_v38  ;;  %3861 = vmatprep.subr.bf16.mxu1 %v4651_v6 }
 0x157   :  { %3031 = vmatprep.subr.bf16.mxu0 %v4651_v6  ;;  %2738 = vmatprep.mubr.bf16.mxu1 %v5172_v61 }
 0x158   :  { %2964 = vmatprep.mubr.bf16.mxu0 %v5234_v42 }
 0x159   :  { %3877 = vmatpush1.bf16.msra.mxu1 %v4649_v44 }
 0x15a   :  { %3032 = vmatpush1.bf16.msra.mxu0 %v4649_v44  ;;  %3862 = vmatprep.subr.bf16.mxu1 %v4654_v14  ;;  %v5357_v44 = vshrl.u32 %v411_v32, 7 }
 0x15b   :  { %3033 = vmatprep.subr.bf16.mxu0 %v4654_v14 }
 0x15c   :  { %2739 = vmatmul.mubr.bf16.gmra.mrb[40].mxu1 %v5178_v1  ;;  %v4658_v1 = vld [vmem:[#allocation5 + $0x730] ss:$24 sps:$4 sm:$0xff]  }
 0x15d   :  { %2965 = vmatmul.mubr.bf16.gmra.mrb[40].mxu0 %v5237_v52  ;;  %3878 = vmatpush1.bf16.msra.mxu1 %v4652_v51 }
 0x15e   :  { %3034 = vmatpush1.bf16.msra.mxu0 %v4652_v51  ;;  %3863 = vmatprep.subr.bf16.mxu1 %v4657_v35  ;;  %v4914_v51 = vld [vmem:[#allocation3 + $0x40] ss:$24 sps:$4 sm:$0xff]  }
 0x15f   :  { %3035 = vmatprep.subr.bf16.mxu0 %v4657_v35  ;;  %v5281_v28 = vpop.f32.mrb[0].mxu1  ;;  %2748 = vmatprep.mubr.bf16.mxu1 %v5180_v7  ;;  %v4661_v7 = vld [vmem:[#allocation5 + $0x760] ss:$24 sps:$4 sm:$0xff]  }
 0x160   :  { %2974 = vmatprep.mubr.bf16.mxu0 %v5240_v9  ;;  %v5285_v61 = vpop.f32.mrb[1].mxu1  ;;  %v4666_v9 = vld [vmem:[#allocation5 + $0x794] ss:$24 sps:$4 sm:$0xff]   ;;  %v5364_v35 = vld [vmem:[#allocation7] sm:$0x3f] }
 0x161   :  { %v5287_v42 = vpop.f32.mrb[2].mxu1  ;;  %3879 = vmatpush1.bf16.msra.mxu1 %v4655_v56 }
 0x162   :  { %3036 = vmatpush1.bf16.msra.mxu0 %v4655_v56  ;;  %v5289_v52 = vpop.f32.mrb[3].mxu1  ;;  %3864 = vmatprep.subr.bf16.mxu1 %v4660_v33  ;;  %v417_v56 = vsub.s32 1, %v5357_v44 }
 0x163   :  { %3037 = vmatprep.subr.bf16.mxu0 %v4660_v33 }
 0x164   :  { %2749 = vmatmul.mubr.bf16.gmra.mrb[44].mxu1 %v5186_v13  ;;  %v4664_v13 = vld [vmem:[#allocation5 + $0x790] ss:$24 sps:$4 sm:$0xff]  }
 0x165   :  { %2975 = vmatmul.mubr.bf16.gmra.mrb[44].mxu0 %v5243_v0  ;;  %3880 = vmatpush1.bf16.msra.mxu1 %v4658_v1 }
 0x166   :  { %3038 = vmatpush1.bf16.msra.mxu0 %v4658_v1  ;;  %3865 = vmatprep.subr.bf16.mxu1 %v4663_v34 }
 0x167   :  { %3039 = vmatprep.subr.bf16.mxu0 %v4663_v34  ;;  %v5293_v47 = vpop.f32.mrb[4].mxu1  ;;  %2758 = vmatprep.mubr.bf16.mxu1 %v5188_v19 }
 0x168   :  { %2984 = vmatprep.mubr.bf16.mxu0 %v5246_v10  ;;  %v5297_v36 = vpop.f32.mrb[5].mxu1  ;;  %v4672_v10 = vld [vmem:[#allocation5 + $0x7f4] ss:$24 sps:$4 sm:$0xff]  }
 0x169   :  { %v5299_v39 = vpop.f32.mrb[6].mxu1  ;;  %3881 = vmatpush1.bf16.msra.mxu1 %v4661_v7 }
 0x16a   :  { %3040 = vmatpush1.bf16.msra.mxu0 %v4661_v7  ;;  %v5301_v0 = vpop.f32.mrb[7].mxu1  ;;  %3866 = vmatprep.subr.bf16.mxu1 %v4666_v9 }
 0x16b   :  { %3041 = vmatprep.subr.bf16.mxu0 %v4666_v9  ;;  %v5379_v9 = vrot.slane %v5364_v35, %v417_v56 }
 0x16c   :  { %2759 = vmatmul.mubr.bf16.gmra.mrb[48].mxu1 %v5194_v25 }
 0x16d   :  { %2985 = vmatmul.mubr.bf16.gmra.mrb[48].mxu0 %v5249_v20  ;;  %3882 = vmatpush1.bf16.msra.mxu1 %v4664_v13 }
 0x16e   :  { %3042 = vmatpush1.bf16.msra.mxu0 %v4664_v13  ;;  %3867 = vmatprep.subr.bf16.mxu1 %v4669_v40  ;;  %v4917_v13 = vld [vmem:[#allocation3 + $0xa4] ss:$24 sps:$4 sm:$0xff]  }
 0x16f   :  { %3043 = vmatprep.subr.bf16.mxu0 %v4669_v40  ;;  %v5305_v46 = vpop.f32.mrb[8].mxu1  ;;  %2768 = vmatprep.mubr.bf16.mxu1 %v5196_v30 }
 0x170   :  { %2994 = vmatprep.mubr.bf16.mxu0 %v5252_v41  ;;  %v5309_v60 = vpop.f32.mrb[9].mxu1  ;;  %v4678_v41 = vld [vmem:[#allocation5 + $0x854] ss:$24 sps:$4 sm:$0xff]  }
 0x171   :  { %v5311_v48 = vpop.f32.mrb[10].mxu1  ;;  %3883 = vmatpush1.bf16.msra.mxu1 %v4667_v45 }
 0x172   :  { %3044 = vmatpush1.bf16.msra.mxu0 %v4667_v45  ;;  %v5313_v20 = vpop.f32.mrb[11].mxu1  ;;  %3868 = vmatprep.subr.bf16.mxu1 %v4672_v10  ;;  %v2158_v45 = vadd.f32 %v5285_v61, %v5379_v9 }
 0x173   :  { %3045 = vmatprep.subr.bf16.mxu0 %v4672_v10 }
 0x174   :  { %2769 = vmatmul.mubr.bf16.gmra.mrb[52].mxu1 %v5202_v37 }
 0x175   :  { %2995 = vmatmul.mubr.bf16.gmra.mrb[52].mxu0 %v5255_v54  ;;  %3884 = vmatpush1.bf16.msra.mxu1 %v4670_v53 }
 0x176   :  { %3046 = vmatpush1.bf16.msra.mxu0 %v4670_v53  ;;  %3869 = vmatprep.subr.bf16.mxu1 %v4675_v2 }
 0x177   :  { %3047 = vmatprep.subr.bf16.mxu0 %v4675_v2  ;;  %v5317_v58 = vpop.f32.mrb[12].mxu1  ;;  %2778 = vmatprep.mubr.bf16.mxu1 %v5204_v43 }
 0x178   :  { %3004 = vmatprep.mubr.bf16.mxu0 %v5258_v55  ;;  %v5321_v59 = vpop.f32.mrb[13].mxu1  ;;  %v4684_v55 = vld [vmem:[#allocation5 + $0x8b4] ss:$24 sps:$4 sm:$0xff]  }
 0x179   :  { %v5323_v62 = vpop.f32.mrb[14].mxu1  ;;  %3885 = vmatpush1.bf16.msra.mxu1 %v4673_v57 }
 0x17a   :  { %3048 = vmatpush1.bf16.msra.mxu0 %v4673_v57  ;;  %v5325_v54 = vpop.f32.mrb[15].mxu1  ;;  %3870 = vmatprep.subr.bf16.mxu1 %v4678_v41 }
 0x17b   :  { %3049 = vmatprep.subr.bf16.mxu0 %v4678_v41  ;;  %v2162_v41 = vadd.f32 %v5289_v52, %v5379_v9  ;;  %v2168_v52 = vadd.f32 %v5297_v36, %v5379_v9 }
 0x17c   :  { %2779 = vmatmul.mubr.bf16.gmra.mrb[56].mxu1 %v5210_v50 }
 0x17d   :  { %3005 = vmatmul.mubr.bf16.gmra.mrb[56].mxu0 %v5261_v63  ;;  %3886 = vmatpush1.bf16.msra.mxu1 %v4676_v11 }
 0x17e   :  { %3050 = vmatpush1.bf16.msra.mxu0 %v4676_v11  ;;  %3871 = vmatprep.subr.bf16.mxu1 %v4681_v16 }
 0x17f   :  { %3051 = vmatprep.subr.bf16.mxu0 %v4681_v16  ;;  %v5329_v4 = vpop.f32.mrb[16].mxu1  ;;  %2788 = vmatprep.mubr.bf16.mxu1 %v5212_v49 }
 0x180   :  { %3014 = vmatprep.mubr.bf16.mxu0 %v5264_v17  ;;  %v5333_v24 = vpop.f32.mrb[17].mxu1 }
 0x181   :  { %v5335_v8 = vpop.f32.mrb[18].mxu1  ;;  %3887 = vmatpush1.bf16.msra.mxu1 %v4679_v3 }
 0x182   :  { %3052 = vmatpush1.bf16.msra.mxu0 %v4679_v3  ;;  %v5337_v63 = vpop.f32.mrb[19].mxu1  ;;  %3872 = vmatprep.subr.bf16.mxu1 %v4684_v55 }
 0x183   :  { %3053 = vmatprep.subr.bf16.mxu0 %v4684_v55 }
 0x184   :  { %2789 = vmatmul.mubr.bf16.gmra.mrb[60].mxu1 %v5218_v5 }
 0x185   :  { %3015 = vmatmul.mubr.bf16.gmra.mrb[60].mxu0 %v4910_v15  ;;  %3888 = vmatpush1.bf16.msra.mxu1 %v4682_v23 }
 0x186   :  { %3054 = vmatpush1.bf16.msra.mxu0 %v4682_v23  ;;  %3873 = vmatprep.subr.bf16.mxu1 %v4687_v12 }
 0x187   :  { %3055 = vmatprep.subr.bf16.mxu0 %v4687_v12  ;;  %v5340_v17 = vpop.f32.mrb[20].mxu1  ;;  %3057 = vmatprep.mubr.bf16.mxu0 %v4911_v29 }
 0x188   :  { %3097 = vmatprep.mubr.bf16.mxu1 %v5188_v19  ;;  %v5343_v21 = vpop.f32.mrb[21].mxu1 }
 0x189   :  { %v5345_v22 = vpop.f32.mrb[22].mxu1  ;;  %3889 = vmatpush1.bf16.msra.mxu1 %v4685_v18 }
 0x18a   :  { %3056 = vmatpush1.bf16.msra.mxu0 %v4685_v18  ;;  %v5347_v26 = vpop.f32.mrb[23].mxu1  ;;  %v2172_v18 = vadd.f32 %v5301_v0, %v5379_v9 }
 0x18c   :  { %3098 = vmatmul.mubr.bf16.vlgmr.msra.gmra.mrb[64].mxu1 %v5194_v25  ;;  %v4915_v25 = vld [vmem:[#allocation3 + $0x74] ss:$24 sps:$4 sm:$0xff]  }
 0x18d   :  { %3058 = vmatmul.mubr.bf16.vlgmr.msra.gmra.mrb[32].mxu0 %v4912_v27  ;;  %3107 = vmatprep.mubr.bf16.mxu1 %v5196_v30  ;;  %v413_v30 = vsub.s32 0, %v5357_v44 }
 0x18e   :  { %3067 = vmatprep.mubr.bf16.mxu0 %v4913_v31 }
 0x18f   :  { %v5351_v38 = vpop.f32.mrb[24].mxu1  ;;  %v5374_v7 = vrot.slane %v5364_v35, %v413_v30 }
 0x190   :  { %v5353_v19 = vpop.f32.mrb[25].mxu1 }
 0x191   :  { %v5355_v6 = vpop.f32.mrb[26].mxu1  ;;  %v2156_v40 = vadd.f32 %v5281_v28, %v5374_v7  ;;  %v2160_v53 = vadd.f32 %v5287_v42, %v5374_v7  ;;  %v4918_v28 = vld [vmem:[#allocation3 + $0xa0] ss:$24 sps:$4 sm:$0xff]   ;;  %v2166_v61 = vadd.f32 %v5293_v47, %v5374_v7  ;;  %v5394_v42 = vld [vmem:[#allocation8] sm:$0x3f]  ;;  %v2170_v23 = vadd.f32 %v5299_v39, %v5374_v7 }
 0x192   :  { %v5359_v14 = vpop.f32.mrb[27].mxu1  ;;  %v5406_v47 = vrot.slane %v5394_v42, %v417_v56  ;;  %v2178_v56 = vadd.f32 %v5309_v60, %v5379_v9 }
 0x194   :  { %3108 = vmatmul.mubr.bf16.gmra.mrb[68].mxu1 %v5202_v37 }
 0x195   :  { %3068 = vmatmul.mubr.bf16.gmra.mrb[36].mxu0 %v4914_v51  ;;  %3117 = vmatprep.mubr.bf16.mxu1 %v5204_v43  ;;  %v4916_v43 = vld [vmem:[#allocation3 + $0x70] ss:$24 sps:$4 sm:$0xff]  }
 0x196   :  { %3077 = vmatprep.mubr.bf16.mxu0 %v4915_v25 }
 0x197   :  { %v5367_v33 = vpop.f32.mrb[28].mxu1 }
 0x198   :  { %v5369_v1 = vpop.f32.mrb[29].mxu1 }
 0x199   :  { %v5371_v34 = vpop.f32.mrb[30].mxu1 }
 0x19a   :  { %v5376_v37 = vpop.f32.mrb[31].mxu1 }
 0x19c   :  { %3118 = vmatmul.mubr.bf16.gmra.mrb[72].mxu1 %v5210_v50 }
 0x19d   :  { %3078 = vmatmul.mubr.bf16.gmra.mrb[40].mxu0 %v4916_v43  ;;  %3127 = vmatprep.mubr.bf16.mxu1 %v5212_v49 }
 0x19e   :  { %3087 = vmatprep.mubr.bf16.mxu0 %v4917_v13 }
 0x1a0   :  { %v2381_v10 = vpop.f32.mrb[0].mxu0 }
 0x1a1   :  { %v3891_v2 = vadd.f32 %v2381_v10, %v2156_v40  ;;  %v2383_v57 = vpop.f32.mrb[1].mxu0  ;;  %v2180_v10 = vadd.f32 %v5311_v48, %v5374_v7 }
 0x1a2   :  { %v3893_v50 = vadd.f32 %v2383_v57, %v2158_v45  ;;  %v2385_v11 = vpop.f32.mrb[2].mxu0 }
 0x1a3   :  { %4688 = vtanh.f32 %v3891_v2  ;;  %v3895_v16 = vadd.f32 %v2385_v11, %v2160_v53  ;;  %v2387_v49 = vpop.f32.mrb[3].mxu0 }
 0x1a4   :  { %4690 = vtanh.f32 %v3893_v50  ;;  %v3897_v3 = vadd.f32 %v2387_v49, %v2162_v41  ;;  %3128 = vmatmul.mubr.bf16.gmra.mrb[76].mxu1 %v5218_v5  ;;  %v5403_v5 = vrot.slane %v5394_v42, %v413_v30  ;;  %v2176_v30 = vadd.f32 %v5305_v46, %v5374_v7 }
 0x1a5   :  { %4692 = vtanh.f32 %v3895_v16  ;;  %3088 = vmatmul.mubr.bf16.gmra.mrb[44].mxu0 %v4918_v28  ;;  %v2182_v46 = vadd.f32 %v5313_v20, %v5379_v9 }
 0x1a6   :  { %4694 = vtanh.f32 %v3897_v3 }
 0x1a8   :  { %v2391_v55 = vpop.f32.mrb[4].mxu0 }
 0x1a9   :  { %v3899_v12 = vadd.f32 %v2391_v55, %v2166_v61  ;;  %v2393_v15 = vpop.f32.mrb[5].mxu0  ;;  %v2186_v55 = vadd.f32 %v5317_v58, %v5374_v7  ;;  %v2192_v58 = vadd.f32 %v5325_v54, %v5379_v9 }
 0x1aa   :  { %v3901_v29 = vadd.f32 %v2393_v15, %v2168_v52  ;;  %v2395_v27 = vpop.f32.mrb[6].mxu0 }
 0x1ab   :  { %4696 = vtanh.f32 %v3899_v12  ;;  %v3903_v31 = vadd.f32 %v2395_v27, %v2170_v23  ;;  %v2397_v36 = vpop.f32.mrb[7].mxu0  ;;  %v2188_v12 = vadd.f32 %v5321_v59, %v5379_v9 }
 0x1ac   :  { %4698 = vtanh.f32 %v3901_v29  ;;  %v3905_v32 = vadd.f32 %v2397_v36, %v2172_v18  ;;  %v2190_v29 = vadd.f32 %v5323_v62, %v5374_v7 }
 0x1ad   :  { %v4689_v51 = vpop.eup %4688  ;;  %4700 = vtanh.f32 %v3903_v31 }
 0x1ae   :  { %v4691_v39 = vpop.eup %4690  ;;  %4702 = vtanh.f32 %v3905_v32  ;;  %v3266_v25 = vmul.f32 %v4689_v51, %v5403_v5 }
 0x1af   :  { %v4693_v0 = vpop.eup %4692  ;;  %v3267_v43 = vmul.f32 %v4691_v39, %v5406_v47 }
 0x1b0   :  { %v4695_v13 = vpop.eup %4694  ;;  %v2401_v40 = vpop.f32.mrb[8].mxu0  ;;  %v3272_v45 = vmul.f32 %v4693_v0, %v5403_v5 }
 0x1b1   :  { %v3907_v53 = vadd.f32 %v2401_v40, %v2176_v30  ;;  %v2403_v2 = vpop.f32.mrb[9].mxu0  ;;  %v5417_v57 = vadd.f32 %v3267_v43, %v3266_v25  ;;  %v3273_v41 = vmul.f32 %v4695_v13, %v5406_v47  ;;  %v2196_v40 = vadd.f32 %v5329_v4, %v5374_v7 }
 0x1b2   :  { %v3909_v50 = vadd.f32 %v2403_v2, %v2178_v56  ;;  %v2405_v11 = vpop.f32.mrb[10].mxu0  ;;  %v2202_v4 = vadd.f32 %v5337_v63, %v5379_v9 }
 0x1b3   :  { %4704 = vtanh.f32 %v3907_v53  ;;  %v3911_v16 = vadd.f32 %v2405_v11, %v2180_v10  ;;  %v2407_v60 = vpop.f32.mrb[11].mxu0  ;;  %v5422_v49 = vadd.f32 %v3273_v41, %v3272_v45  ;;  %v2198_v10 = vadd.f32 %v5333_v24, %v5379_v9 }
 0x1b4   :  { %4706 = vtanh.f32 %v3909_v50  ;;  %v3913_v3 = vadd.f32 %v2407_v60, %v2182_v46  ;;  %v2200_v41 = vadd.f32 %v5335_v8, %v5374_v7 }
 0x1b5   :  { %v4697_v28 = vpop.eup %4696  ;;  %4708 = vtanh.f32 %v3911_v16 }
 0x1b6   :  { %v4699_v48 = vpop.eup %4698  ;;  %4710 = vtanh.f32 %v3913_v3  ;;  %v3278_v61 = vmul.f32 %v4697_v28, %v5403_v5 }
 0x1b7   :  { %v4701_v52 = vpop.eup %4700  ;;  %v3279_v20 = vmul.f32 %v4699_v48, %v5406_v47 }
 0x1b8   :  { %v4703_v23 = vpop.eup %4702  ;;  %v2411_v15 = vpop.f32.mrb[12].mxu0  ;;  %v3284_v18 = vmul.f32 %v4701_v52, %v5403_v5 }
 0x1b9   :  { %v3915_v27 = vadd.f32 %v2411_v15, %v2186_v55  ;;  %v2413_v31 = vpop.f32.mrb[13].mxu0  ;;  %v5433_v36 = vadd.f32 %v3279_v20, %v3278_v61  ;;  %v3285_v32 = vmul.f32 %v4703_v23, %v5406_v47  ;;  %v2206_v23 = vadd.f32 %v5340_v17, %v5374_v7 }
 0x1ba   :  { %v3917_v51 = vadd.f32 %v2413_v31, %v2188_v12  ;;  %v2415_v39 = vpop.f32.mrb[14].mxu0  ;;  %v2208_v15 = vadd.f32 %v5343_v21, %v5379_v9  ;;  %v2212_v17 = vadd.f32 %v5347_v26, %v5379_v9 }
 0x1bb   :  { %4712 = vtanh.f32 %v3915_v27  ;;  %v3919_v25 = vadd.f32 %v2415_v39, %v2190_v29  ;;  %v2417_v59 = vpop.f32.mrb[15].mxu0  ;;  %v5438_v0 = vadd.f32 %v3285_v32, %v3284_v18  ;;  %v2210_v27 = vadd.f32 %v5345_v22, %v5374_v7 }
 0x1bc   :  { %4714 = vtanh.f32 %v3917_v51  ;;  %v3921_v30 = vadd.f32 %v2417_v59, %v2192_v58 }
 0x1bd   :  { %v4705_v43 = vpop.eup %4704  ;;  %4716 = vtanh.f32 %v3919_v25 }
 0x1be   :  { %v4707_v62 = vpop.eup %4706  ;;  %4718 = vtanh.f32 %v3921_v30  ;;  %v3290_v13 = vmul.f32 %v4705_v43, %v5403_v5 }
 0x1bf   :  { %v4709_v56 = vpop.eup %4708  ;;  %v3291_v54 = vmul.f32 %v4707_v62, %v5406_v47 }
 0x1c0   :  { %v4711_v45 = vpop.eup %4710  ;;  %v2421_v53 = vpop.f32.mrb[16].mxu0  ;;  %v3296_v2 = vmul.f32 %v4709_v56, %v5403_v5 }
 0x1c1   :  { %v3923_v46 = vadd.f32 %v2421_v53, %v2196_v40  ;;  %v2423_v50 = vpop.f32.mrb[17].mxu0  ;;  %v5449_v11 = vadd.f32 %v3291_v54, %v3290_v13  ;;  %v3297_v16 = vmul.f32 %v4711_v45, %v5406_v47  ;;  %v2216_v40 = vadd.f32 %v5351_v38, %v5374_v7 }
 0x1c2   :  { %v3925_v60 = vadd.f32 %v2423_v50, %v2198_v10  ;;  %v2425_v3 = vpop.f32.mrb[18].mxu0  ;;  %v2218_v45 = vadd.f32 %v5353_v19, %v5379_v9  ;;  %v2222_v38 = vadd.f32 %v5359_v14, %v5379_v9 }
 0x1c3   :  { %4720 = vtanh.f32 %v3923_v46  ;;  %v3927_v28 = vadd.f32 %v2425_v3, %v2200_v41  ;;  %v2427_v24 = vpop.f32.mrb[19].mxu0  ;;  %v5454_v48 = vadd.f32 %v3297_v16, %v3296_v2  ;;  %v2220_v2 = vadd.f32 %v5355_v6, %v5374_v7 }
 0x1c4   :  { %4722 = vtanh.f32 %v3925_v60  ;;  %v3929_v61 = vadd.f32 %v2427_v24, %v2202_v4 }
 0x1c5   :  { %v4713_v52 = vpop.eup %4712  ;;  %4724 = vtanh.f32 %v3927_v28 }
 0x1c6   :  { %v4715_v8 = vpop.eup %4714  ;;  %4726 = vtanh.f32 %v3929_v61  ;;  %v3302_v55 = vmul.f32 %v4713_v52, %v5403_v5 }
 0x1c7   :  { %v4717_v20 = vpop.eup %4716  ;;  %v3303_v63 = vmul.f32 %v4715_v8, %v5406_v47 }
 0x1c8   :  { %v4719_v12 = vpop.eup %4718  ;;  %v2431_v18 = vpop.f32.mrb[20].mxu0  ;;  %v3308_v29 = vmul.f32 %v4717_v20, %v5403_v5 }
 0x1c9   :  { %v3931_v31 = vadd.f32 %v2431_v18, %v2206_v23  ;;  %v2433_v32 = vpop.f32.mrb[21].mxu0  ;;  %v5465_v58 = vadd.f32 %v3303_v63, %v3302_v55  ;;  %v3309_v51 = vmul.f32 %v4719_v12, %v5406_v47  ;;  %v2226_v55 = vadd.f32 %v5367_v33, %v5374_v7 }
 0x1ca   :  { %v3933_v39 = vadd.f32 %v2433_v32, %v2208_v15  ;;  %v2435_v25 = vpop.f32.mrb[22].mxu0  ;;  %v2228_v23 = vadd.f32 %v5369_v1, %v5379_v9  ;;  %v2230_v15 = vadd.f32 %v5371_v34, %v5374_v7  ;;  %v2232_v33 = vadd.f32 %v5376_v37, %v5379_v9 }
 0x1cb   :  { %4728 = vtanh.f32 %v3931_v31  ;;  %v3935_v59 = vadd.f32 %v2435_v25, %v2210_v27  ;;  %v2437_v21 = vpop.f32.mrb[23].mxu0  ;;  %v5470_v30 = vadd.f32 %v3309_v51, %v3308_v29 }
 0x1cc   :  { %4730 = vtanh.f32 %v3933_v39  ;;  %v3937_v43 = vadd.f32 %v2437_v21, %v2212_v17 }
 0x1cd   :  { %v4721_v62 = vpop.eup %4720  ;;  %4732 = vtanh.f32 %v3935_v59 }
 0x1ce   :  { %v4723_v22 = vpop.eup %4722  ;;  %4734 = vtanh.f32 %v3937_v43  ;;  %v3314_v13 = vmul.f32 %v4721_v62, %v5403_v5 }
 0x1cf   :  { %v4725_v56 = vpop.eup %4724  ;;  %v3315_v26 = vmul.f32 %v4723_v22, %v5406_v47 }
 0x1d0   :  { %v4727_v54 = vpop.eup %4726  ;;  %v2441_v10 = vpop.f32.mrb[24].mxu0  ;;  %v3320_v53 = vmul.f32 %v4725_v56, %v5403_v5 }
 0x1d1   :  { %v3939_v41 = vadd.f32 %v2441_v10, %v2216_v40  ;;  %v2443_v46 = vpop.f32.mrb[25].mxu0  ;;  %v3321_v50 = vmul.f32 %v4727_v54, %v5406_v47  ;;  %v5482_v16 = vadd.f32 %v3315_v26, %v3314_v13 }
 0x1d2   :  { %v3941_v4 = vadd.f32 %v2443_v46, %v2218_v45  ;;  %v2445_v60 = vpop.f32.mrb[26].mxu0 }
 0x1d3   :  { %4736 = vtanh.f32 %v3939_v41  ;;  %v3943_v3 = vadd.f32 %v2445_v60, %v2220_v2  ;;  %v2447_v19 = vpop.f32.mrb[27].mxu0  ;;  %v5486_v28 = vadd.f32 %v3321_v50, %v3320_v53  ;;  %v421_v50 = vsub.s32 2, %v5357_v44 }
 0x1d4   :  { %4738 = vtanh.f32 %v3941_v4  ;;  %v3945_v24 = vadd.f32 %v2447_v19, %v2222_v38  ;;  %v425_v38 = vsub.s32 3, %v5357_v44 }
 0x1d5   :  { %v4729_v61 = vpop.eup %4728  ;;  %4740 = vtanh.f32 %v3943_v3  ;;  %v5523_v4 = vrot.slane %v5364_v35, %v421_v50 }
 0x1d6   :  { %v4731_v6 = vpop.eup %4730  ;;  %4742 = vtanh.f32 %v3945_v24  ;;  %v3326_v52 = vmul.f32 %v4729_v61, %v5403_v5  ;;  %v5526_v60 = vrot.slane %v5364_v35, %v425_v38 }
 0x1d7   :  { %v4733_v8 = vpop.eup %4732  ;;  %v3327_v14 = vmul.f32 %v4731_v6, %v5406_v47 }
 0x1d8   :  { %v4735_v20 = vpop.eup %4734  ;;  %v2451_v63 = vpop.f32.mrb[28].mxu0  ;;  %v3332_v12 = vmul.f32 %v4733_v8, %v5403_v5 }
 0x1d9   :  { %v3947_v18 = vadd.f32 %v2451_v63, %v2226_v55  ;;  %v2453_v29 = vpop.f32.mrb[29].mxu0  ;;  %v5497_v27 = vadd.f32 %v3327_v14, %v3326_v52  ;;  %v3333_v31 = vmul.f32 %v4735_v20, %v5406_v47  ;;  %v5534_v20 = vrot.slane %v5394_v42, %v421_v50 }
 0x1da   :  { %v3949_v32 = vadd.f32 %v2453_v29, %v2228_v23  ;;  %v2455_v51 = vpop.f32.mrb[30].mxu0 }
 0x1db   :  { %4744 = vtanh.f32 %v3947_v18  ;;  %v3951_v17 = vadd.f32 %v2455_v51, %v2230_v15  ;;  %v2457_v1 = vpop.f32.mrb[31].mxu0  ;;  %v5502_v39 = vadd.f32 %v3333_v31, %v3332_v12  ;;  %v5538_v12 = vrot.slane %v5394_v42, %v425_v38 }
 0x1dc   :  { %4746 = vtanh.f32 %v3949_v32  ;;  %v3953_v25 = vadd.f32 %v2457_v1, %v2232_v33 }
 0x1dd   :  { %v4737_v59 = vpop.eup %4736  ;;  %4748 = vtanh.f32 %v3951_v17 }
 0x1de   :  { %v4739_v34 = vpop.eup %4738  ;;  %4750 = vtanh.f32 %v3953_v25  ;;  %v3338_v7 = vmul.f32 %v4737_v59, %v5403_v5 }
 0x1df   :  { %v4741_v21 = vpop.eup %4740  ;;  %v3339_v43 = vmul.f32 %v4739_v34, %v5406_v47 }
 0x1e0   :  { %v4743_v62 = vpop.eup %4742  ;;  %v3344_v37 = vmul.f32 %v4741_v21, %v5403_v5 }
 0x1e1   :  { %v5507_v9 = vadd.f32 %v3339_v43, %v3338_v7  ;;  %v3345_v22 = vmul.f32 %v4743_v62, %v5406_v47 }
 0x1e3   :  { %v5510_v13 = vadd.f32 %v3345_v22, %v3344_v37 }
 0x1e5   :  { %v4745_v56 = vpop.eup %4744 }
 0x1e6   :  { %v4747_v40 = vpop.eup %4746  ;;  %v3350_v26 = vmul.f32 %v4745_v56, %v5403_v5 }
 0x1e7   :  { %v4749_v54 = vpop.eup %4748  ;;  %v3351_v45 = vmul.f32 %v4747_v40, %v5406_v47 }
 0x1e8   :  { %v4751_v10 = vpop.eup %4750  ;;  %v3356_v53 = vmul.f32 %v4749_v54, %v5403_v5 }
 0x1e9   :  { %v5515_v2 = vadd.f32 %v3351_v45, %v3350_v26  ;;  %v3357_v41 = vmul.f32 %v4751_v10, %v5406_v47 }
 0x1eb   :  { %v5518_v46 = vadd.f32 %v3357_v41, %v3356_v53 }
 0x21f   :  { %v2720_v3 = vpop.f32.mrb[32].mxu1 }
 0x220   :  { %v3954_v19 = vadd.f32 %v2720_v3, %v5523_v4  ;;  %v2722_v5 = vpop.f32.mrb[33].mxu1 }
 0x221   :  { %v3955_v24 = vadd.f32 %v2722_v5, %v5526_v60  ;;  %v2724_v61 = vpop.f32.mrb[34].mxu1 }
 0x222   :  { %4752 = vtanh.f32 %v3954_v19  ;;  %v3956_v47 = vadd.f32 %v2724_v61, %v5523_v4  ;;  %v2726_v6 = vpop.f32.mrb[35].mxu1 }
 0x223   :  { %4754 = vtanh.f32 %v3955_v24  ;;  %v3957_v52 = vadd.f32 %v2726_v6, %v5526_v60 }
 0x224   :  { %4756 = vtanh.f32 %v3956_v47 }
 0x225   :  { %4758 = vtanh.f32 %v3957_v52 }
 0x227   :  { %v2730_v8 = vpop.f32.mrb[36].mxu1 }
 0x228   :  { %v3958_v55 = vadd.f32 %v2730_v8, %v5523_v4  ;;  %v2732_v14 = vpop.f32.mrb[37].mxu1 }
 0x229   :  { %v3959_v23 = vadd.f32 %v2732_v14, %v5526_v60  ;;  %v2734_v63 = vpop.f32.mrb[38].mxu1 }
 0x22a   :  { %4760 = vtanh.f32 %v3958_v55  ;;  %v3960_v15 = vadd.f32 %v2734_v63, %v5523_v4  ;;  %v2736_v18 = vpop.f32.mrb[39].mxu1 }
 0x22b   :  { %4762 = vtanh.f32 %v3959_v23  ;;  %v3961_v29 = vadd.f32 %v2736_v18, %v5526_v60 }
 0x22c   :  { %v4753_v31 = vpop.eup %4752  ;;  %4764 = vtanh.f32 %v3960_v15 }
 0x22d   :  { %v4755_v33 = vpop.eup %4754  ;;  %4766 = vtanh.f32 %v3961_v29  ;;  %v3268_v32 = vmul.f32 %v4753_v31, %v5534_v20 }
 0x22e   :  { %v4757_v51 = vpop.eup %4756  ;;  %v3269_v17 = vmul.f32 %v4755_v33, %v5538_v12 }
 0x22f   :  { %v4759_v1 = vpop.eup %4758  ;;  %v2740_v25 = vpop.f32.mrb[40].mxu1  ;;  %v3363_v59 = vadd.f32 %v5417_v57, %v3268_v32  ;;  %v3274_v34 = vmul.f32 %v4757_v51, %v5534_v20 }
 0x230   :  { %v3962_v7 = vadd.f32 %v2740_v25, %v5523_v4  ;;  %v2742_v21 = vpop.f32.mrb[41].mxu1  ;;  %v3275_v43 = vmul.f32 %v4759_v1, %v5538_v12 }
 0x231   :  { %v3963_v62 = vadd.f32 %v2742_v21, %v5526_v60  ;;  %v2744_v37 = vpop.f32.mrb[42].mxu1  ;;  %v5549_v22 = vadd.f32 %v3363_v59, %v3269_v17  ;;  %v3370_v56 = vadd.f32 %v5422_v49, %v3274_v34 }
 0x232   :  { %4768 = vtanh.f32 %v3962_v7  ;;  %v3964_v40 = vadd.f32 %v2744_v37, %v5523_v4  ;;  %v2746_v26 = vpop.f32.mrb[43].mxu1 }
 0x233   :  { %4770 = vtanh.f32 %v3963_v62  ;;  %v3965_v57 = vadd.f32 %v2746_v26, %v5526_v60  ;;  %v5554_v54 = vadd.f32 %v3370_v56, %v3275_v43 }
 0x234   :  { %v4761_v45 = vpop.eup %4760  ;;  %4772 = vtanh.f32 %v3964_v40 }
 0x235   :  { %v4763_v10 = vpop.eup %4762  ;;  %4774 = vtanh.f32 %v3965_v57  ;;  %v3280_v53 = vmul.f32 %v4761_v45, %v5534_v20 }
 0x236   :  { %v4765_v41 = vpop.eup %4764  ;;  %v3281_v50 = vmul.f32 %v4763_v10, %v5538_v12 }
 0x237   :  { %v4767_v38 = vpop.eup %4766  ;;  %v2750_v49 = vpop.f32.mrb[44].mxu1  ;;  %v3377_v3 = vadd.f32 %v5433_v36, %v3280_v53  ;;  %v3286_v19 = vmul.f32 %v4765_v41, %v5534_v20 }
 0x238   :  { %v3966_v5 = vadd.f32 %v2750_v49, %v5523_v4  ;;  %v2752_v24 = vpop.f32.mrb[45].mxu1  ;;  %v3287_v61 = vmul.f32 %v4767_v38, %v5538_v12 }
 0x239   :  { %v3967_v47 = vadd.f32 %v2752_v24, %v5526_v60  ;;  %v2754_v6 = vpop.f32.mrb[46].mxu1  ;;  %v5563_v52 = vadd.f32 %v3377_v3, %v3281_v50  ;;  %v3384_v8 = vadd.f32 %v5438_v0, %v3286_v19 }
 0x23a   :  { %4776 = vtanh.f32 %v3966_v5  ;;  %v3968_v55 = vadd.f32 %v2754_v6, %v5523_v4  ;;  %v2756_v14 = vpop.f32.mrb[47].mxu1 }
 0x23b   :  { %4778 = vtanh.f32 %v3967_v47  ;;  %v3969_v36 = vadd.f32 %v2756_v14, %v5526_v60  ;;  %v5568_v23 = vadd.f32 %v3384_v8, %v3287_v61 }
 0x23c   :  { %v4769_v63 = vpop.eup %4768  ;;  %4780 = vtanh.f32 %v3968_v55 }
 0x23d   :  { %v4771_v15 = vpop.eup %4770  ;;  %4782 = vtanh.f32 %v3969_v36  ;;  %v3292_v18 = vmul.f32 %v4769_v63, %v5534_v20 }
 0x23e   :  { %v4773_v29 = vpop.eup %4772  ;;  %v3293_v31 = vmul.f32 %v4771_v15, %v5538_v12 }
 0x23f   :  { %v4775_v33 = vpop.eup %4774  ;;  %v2760_v0 = vpop.f32.mrb[48].mxu1  ;;  %v3391_v51 = vadd.f32 %v5449_v11, %v3292_v18  ;;  %v3298_v17 = vmul.f32 %v4773_v29, %v5534_v20 }
 0x240   :  { %v5572_v32 = vpop.f32.mrb[48].mxu0  ;;  %v3970_v1 = vadd.f32 %v2760_v0, %v5523_v4  ;;  %v2762_v25 = vpop.f32.mrb[49].mxu1  ;;  %v3299_v34 = vmul.f32 %v4775_v33, %v5538_v12 }
 0x241   :  { %v5577_v59 = vpop.f32.mrb[49].mxu0  ;;  %v3971_v7 = vadd.f32 %v2762_v25, %v5526_v60  ;;  %v2764_v21 = vpop.f32.mrb[50].mxu1  ;;  %v5583_v62 = vadd.f32 %v3391_v51, %v3293_v31  ;;  %v3398_v37 = vadd.f32 %v5454_v48, %v3298_v17 }
 0x242   :  { %v5581_v43 = vpop.f32.mrb[50].mxu0  ;;  %4784 = vtanh.f32 %v3970_v1  ;;  %v3972_v11 = vadd.f32 %v2764_v21, %v5523_v4  ;;  %v2766_v56 = vpop.f32.mrb[51].mxu1 }
 0x243   :  { %v5587_v40 = vpop.f32.mrb[51].mxu0  ;;  %4786 = vtanh.f32 %v3971_v7  ;;  %v3973_v26 = vadd.f32 %v2766_v56, %v5526_v60  ;;  %v5590_v57 = vadd.f32 %v3398_v37, %v3299_v34 }
 0x244   :  { %v4777_v45 = vpop.eup %4776  ;;  %4788 = vtanh.f32 %v3972_v11 }
 0x245   :  { %v4779_v10 = vpop.eup %4778  ;;  %4790 = vtanh.f32 %v3973_v26  ;;  %v3304_v53 = vmul.f32 %v4777_v45, %v5534_v20 }
 0x246   :  { %v4781_v41 = vpop.eup %4780  ;;  %v3305_v48 = vmul.f32 %v4779_v10, %v5538_v12 }
 0x247   :  { %v4783_v50 = vpop.eup %4782  ;;  %v2770_v38 = vpop.f32.mrb[52].mxu1  ;;  %v3405_v3 = vadd.f32 %v5465_v58, %v3304_v53  ;;  %v3310_v19 = vmul.f32 %v4781_v41, %v5534_v20 }
 0x248   :  { %v5594_v49 = vpop.f32.mrb[52].mxu0  ;;  %v3974_v5 = vadd.f32 %v2770_v38, %v5523_v4  ;;  %v2772_v24 = vpop.f32.mrb[53].mxu1  ;;  %v3311_v47 = vmul.f32 %v4783_v50, %v5538_v12 }
 0x249   :  { %v5599_v61 = vpop.f32.mrb[53].mxu0  ;;  %v3975_v6 = vadd.f32 %v2772_v24, %v5526_v60  ;;  %v2774_v8 = vpop.f32.mrb[54].mxu1  ;;  %v5605_v14 = vadd.f32 %v3405_v3, %v3305_v48  ;;  %v3412_v36 = vadd.f32 %v5470_v30, %v3310_v19 }
 0x24a   :  { %v5603_v55 = vpop.f32.mrb[54].mxu0  ;;  %4792 = vtanh.f32 %v3974_v5  ;;  %v3976_v58 = vadd.f32 %v2774_v8, %v5523_v4  ;;  %v2776_v63 = vpop.f32.mrb[55].mxu1 }
 0x24b   :  { %v5609_v15 = vpop.f32.mrb[55].mxu0  ;;  %4794 = vtanh.f32 %v3975_v6  ;;  %v3977_v18 = vadd.f32 %v2776_v63, %v5526_v60  ;;  %v5612_v29 = vadd.f32 %v3412_v36, %v3311_v47  ;;  %v429_v47 = vsub.s32 4, %v5357_v44 }
 0x24c   :  { %v4785_v31 = vpop.eup %4784  ;;  %4796 = vtanh.f32 %v3976_v58  ;;  %v433_v36 = vsub.s32 5, %v5357_v44 }
 0x24d   :  { %v4787_v33 = vpop.eup %4786  ;;  %4798 = vtanh.f32 %v3977_v18  ;;  %v3316_v0 = vmul.f32 %v4785_v31, %v5534_v20 }
 0x24e   :  { %v4789_v51 = vpop.eup %4788  ;;  %v3317_v30 = vmul.f32 %v4787_v33, %v5538_v12 }
 0x24f   :  { %v4791_v17 = vpop.eup %4790  ;;  %v2780_v1 = vpop.f32.mrb[56].mxu1  ;;  %v3322_v34 = vmul.f32 %v4789_v51, %v5534_v20  ;;  %v3419_v7 = vadd.f32 %v5482_v16, %v3316_v0 }
 0x250   :  { %v5616_v25 = vpop.f32.mrb[56].mxu0  ;;  %v3978_v21 = vadd.f32 %v2780_v1, %v5523_v4  ;;  %v2782_v37 = vpop.f32.mrb[57].mxu1  ;;  %v3323_v56 = vmul.f32 %v4791_v17, %v5538_v12 }
 0x251   :  { %v5621_v11 = vpop.f32.mrb[57].mxu0  ;;  %v3979_v26 = vadd.f32 %v2782_v37, %v5526_v60  ;;  %v2784_v45 = vpop.f32.mrb[58].mxu1  ;;  %v3426_v53 = vadd.f32 %v5486_v28, %v3322_v34  ;;  %v5628_v41 = vadd.f32 %v3419_v7, %v3317_v30 }
 0x252   :  { %v5625_v10 = vpop.f32.mrb[58].mxu0  ;;  %4800 = vtanh.f32 %v3978_v21  ;;  %v3980_v48 = vadd.f32 %v2784_v45, %v5523_v4  ;;  %v2786_v16 = vpop.f32.mrb[59].mxu1  ;;  %v5665_v45 = vrot.slane %v5364_v35, %v433_v36 }
 0x253   :  { %v5631_v50 = vpop.f32.mrb[59].mxu0  ;;  %4802 = vtanh.f32 %v3979_v26  ;;  %v3981_v38 = vadd.f32 %v2786_v16, %v5526_v60  ;;  %v5634_v3 = vadd.f32 %v3426_v53, %v3323_v56 }
 0x254   :  { %v4793_v19 = vpop.eup %4792  ;;  %4804 = vtanh.f32 %v3980_v48 }
 0x255   :  { %v4795_v5 = vpop.eup %4794  ;;  %4806 = vtanh.f32 %v3981_v38  ;;  %v3328_v24 = vmul.f32 %v4793_v19, %v5534_v20 }
 0x256   :  { %v4797_v28 = vpop.eup %4796  ;;  %v3329_v6 = vmul.f32 %v4795_v5, %v5538_v12 }
 0x257   :  { %v4799_v8 = vpop.eup %4798  ;;  %v2790_v58 = vpop.f32.mrb[60].mxu1  ;;  %v3433_v18 = vadd.f32 %v5497_v27, %v3328_v24  ;;  %v3334_v31 = vmul.f32 %v4797_v28, %v5534_v20  ;;  %v5657_v27 = vrot.slane %v5364_v35, %v429_v47  ;;  %v4004_v35 = vadd.f32 %v5577_v59, %v5665_v45 }
 0x258   :  { %v5640_v63 = vpop.f32.mrb[60].mxu0  ;;  %v3982_v33 = vadd.f32 %v2790_v58, %v5523_v4  ;;  %v2792_v0 = vpop.f32.mrb[61].mxu1  ;;  %v3335_v30 = vmul.f32 %v4799_v8, %v5538_v12 }
 0x259   :  { %v5645_v51 = vpop.f32.mrb[61].mxu0  ;;  %v3983_v17 = vadd.f32 %v2792_v0, %v5526_v60  ;;  %v2794_v1 = vpop.f32.mrb[62].mxu1  ;;  %v5651_v7 = vadd.f32 %v3433_v18, %v3329_v6  ;;  %v3440_v21 = vadd.f32 %v5502_v39, %v3334_v31  ;;  %v4002_v19 = vadd.f32 %v5572_v32, %v5657_v27 }
 0x25a   :  { %v5649_v34 = vpop.f32.mrb[62].mxu0  ;;  %4808 = vtanh.f32 %v3982_v33  ;;  %v3984_v37 = vadd.f32 %v2794_v1, %v5523_v4  ;;  %v2796_v56 = vpop.f32.mrb[63].mxu1  ;;  %v4008_v18 = vadd.f32 %v5587_v40, %v5665_v45 }
 0x25b   :  { %v5660_v26 = vpop.f32.mrb[63].mxu0  ;;  %4810 = vtanh.f32 %v3983_v17  ;;  %v3985_v53 = vadd.f32 %v2796_v56, %v5526_v60  ;;  %v5668_v39 = vadd.f32 %v3440_v21, %v3335_v30  ;;  %v4006_v60 = vadd.f32 %v5581_v43, %v5657_v27 }
 0x25c   :  { %v4801_v48 = vpop.eup %4800  ;;  %4812 = vtanh.f32 %v3984_v37 }
 0x25d   :  { %v4803_v16 = vpop.eup %4802  ;;  %4814 = vtanh.f32 %v3985_v53  ;;  %v3340_v38 = vmul.f32 %v4801_v48, %v5534_v20 }
 0x25e   :  { %v4805_v4 = vpop.eup %4804  ;;  %v3341_v5 = vmul.f32 %v4803_v16, %v5538_v12 }
 0x25f   :  { %v4807_v24 = vpop.eup %4806  ;;  %v3099_v6 = vpop.f32.mrb[64].mxu1  ;;  %v3447_v8 = vadd.f32 %v5507_v9, %v3340_v38  ;;  %v3346_v58 = vmul.f32 %v4805_v4, %v5534_v20 }
 0x260   :  { %v3059_v28 = vpop.f32.mrb[32].mxu0  ;;  %v4003_v31 = vadd.f32 %v4002_v19, %v3099_v6  ;;  %v3101_v0 = vpop.f32.mrb[65].mxu1  ;;  %v3347_v30 = vmul.f32 %v4807_v24, %v5538_v12 }
 0x261   :  { %v3986_v32 = vadd.f32 %v3059_v28, %v5657_v27  ;;  %v3061_v33 = vpop.f32.mrb[33].mxu0  ;;  %v4005_v17 = vadd.f32 %v4004_v35, %v3101_v0  ;;  %v3103_v1 = vpop.f32.mrb[66].mxu1  ;;  %v5685_v21 = vadd.f32 %v3447_v8, %v3341_v5  ;;  %v3454_v9 = vadd.f32 %v5510_v13, %v3346_v58 }
 0x262   :  { %v3987_v59 = vadd.f32 %v3061_v33, %v5665_v45  ;;  %v3063_v43 = vpop.f32.mrb[34].mxu0  ;;  %v4007_v40 = vadd.f32 %v4006_v60, %v3103_v1  ;;  %v3105_v53 = vpop.f32.mrb[67].mxu1  ;;  %v4010_v5 = vadd.f32 %v5594_v49, %v5657_v27  ;;  %v5697_v13 = vrot.slane %v5394_v42, %v429_v47 }
 0x263   :  { %4816 = vtanh.f32 %v3986_v32  ;;  %v3988_v37 = vadd.f32 %v3063_v43, %v5657_v27  ;;  %v3065_v56 = vpop.f32.mrb[35].mxu0  ;;  %v4009_v48 = vadd.f32 %v4008_v18, %v3105_v53  ;;  %v5689_v16 = vadd.f32 %v3454_v9, %v3347_v30 }
 0x264   :  { %4818 = vtanh.f32 %v4003_v31  ;;  %v4809_v38 = vpop.eup %4808  ;;  %v3989_v4 = vadd.f32 %v3065_v56, %v5665_v45  ;;  %v4012_v60 = vadd.f32 %v5599_v61, %v5665_v45  ;;  %v4014_v28 = vadd.f32 %v5603_v55, %v5657_v27 }
 0x265   :  { %4820 = vtanh.f32 %v3987_v59  ;;  %v4811_v19 = vpop.eup %4810  ;;  %v3352_v24 = vmul.f32 %v4809_v38, %v5534_v20  ;;  %v4016_v49 = vadd.f32 %v5609_v15, %v5665_v45  ;;  %v5721_v56 = vrot.slane %v5394_v42, %v433_v36 }
 0x266   :  { %4822 = vtanh.f32 %v4005_v17  ;;  %v4813_v35 = vpop.eup %4812  ;;  %v3353_v6 = vmul.f32 %v4811_v19, %v5538_v12  ;;  %v4024_v19 = vadd.f32 %v5631_v50, %v5665_v45  ;;  %v5735_v36 = vadd.f32 %v5640_v63, %v5657_v27 }
 0x267   :  { %4824 = vtanh.f32 %v3988_v37  ;;  %v4815_v8 = vpop.eup %4814  ;;  %v3109_v47 = vpop.f32.mrb[68].mxu1  ;;  %v3461_v18 = vadd.f32 %v5515_v2, %v3352_v24  ;;  %v3358_v32 = vmul.f32 %v4813_v35, %v5534_v20 }
 0x268   :  { %4826 = vtanh.f32 %v4007_v40  ;;  %v3069_v58 = vpop.f32.mrb[36].mxu0  ;;  %v4011_v31 = vadd.f32 %v4010_v5, %v3109_v47  ;;  %v3111_v55 = vpop.f32.mrb[69].mxu1  ;;  %v3359_v0 = vmul.f32 %v4815_v8, %v5538_v12  ;;  %v4018_v40 = vadd.f32 %v5616_v25, %v5657_v27 }
 0x269   :  { %4828 = vtanh.f32 %v3989_v4  ;;  %v3990_v61 = vadd.f32 %v3069_v58, %v5657_v27  ;;  %v3071_v33 = vpop.f32.mrb[37].mxu0  ;;  %v4013_v59 = vadd.f32 %v4012_v60, %v3111_v55  ;;  %v3113_v17 = vpop.f32.mrb[70].mxu1  ;;  %v5712_v43 = vadd.f32 %v3461_v18, %v3353_v6 }
 0x26a   :  { %4830 = vtanh.f32 %v4009_v48  ;;  %v3991_v30 = vadd.f32 %v3071_v33, %v5665_v45  ;;  %v3073_v15 = vpop.f32.mrb[38].mxu0  ;;  %v4015_v20 = vadd.f32 %v4014_v28, %v3113_v17  ;;  %v3115_v9 = vpop.f32.mrb[71].mxu1  ;;  %v3468_v37 = vadd.f32 %v5518_v46, %v3358_v32 }
 0x26b   :  { %4832 = vtanh.f32 %v3990_v61  ;;  %v3992_v2 = vadd.f32 %v3073_v15, %v5657_v27  ;;  %v3075_v1 = vpop.f32.mrb[39].mxu0  ;;  %v4017_v12 = vadd.f32 %v4016_v49, %v3115_v9  ;;  %v4020_v48 = vadd.f32 %v5621_v11, %v5665_v45 }
 0x26c   :  { %4834 = vtanh.f32 %v4011_v31  ;;  %v3993_v38 = vadd.f32 %v3075_v1, %v5665_v45  ;;  %v5726_v4 = vadd.f32 %v3468_v37, %v3359_v0  ;;  %v4022_v25 = vadd.f32 %v5625_v10, %v5657_v27 }
 0x26d   :  { %v4817_v53 = vpop.eup %4816  ;;  %4836 = vtanh.f32 %v3991_v30  ;;  %v5739_v11 = vadd.f32 %v5645_v51, %v5665_v45  ;;  %v5743_v5 = vadd.f32 %v5649_v34, %v5657_v27 }
 0x26e   :  { %v4819_v46 = vpop.eup %4818  ;;  %4838 = vtanh.f32 %v4013_v59  ;;  %v3270_v44 = vmul.f32 %v4817_v53, %v5697_v13 }
 0x26f   :  { %v4821_v42 = vpop.eup %4820  ;;  %4840 = vtanh.f32 %v3992_v2  ;;  %v3119_v24 = vpop.f32.mrb[72].mxu1  ;;  %v3318_v63 = vmul.f32 %v4819_v46, %v5697_v13 }
 0x270   :  { %v4823_v10 = vpop.eup %4822  ;;  %4842 = vtanh.f32 %v4015_v20  ;;  %v3079_v50 = vpop.f32.mrb[40].mxu0  ;;  %v3271_v35 = vmul.f32 %v4821_v42, %v5721_v56  ;;  %v3365_v60 = vadd.f32 %v5549_v22, %v3270_v44  ;;  %v4019_v6 = vadd.f32 %v4018_v40, %v3119_v24 }
 0x271   :  { %v4825_v28 = vpop.eup %4824  ;;  %4844 = vtanh.f32 %v3993_v38  ;;  %v3994_v51 = vadd.f32 %v3079_v50, %v5657_v27  ;;  %v3081_v8 = vpop.f32.mrb[41].mxu0  ;;  %v3319_v34 = vmul.f32 %v4823_v10, %v5721_v56  ;;  %v3421_v20 = vadd.f32 %v5628_v41, %v3318_v63 }
 0x272   :  { %v3121_v49 = vpop.f32.mrb[73].mxu1  ;;  %v4827_v58 = vpop.eup %4826  ;;  %4846 = vtanh.f32 %v4017_v12  ;;  %v3995_v47 = vadd.f32 %v3081_v8, %v5665_v45  ;;  %v3366_v31 = vadd.f32 %v3365_v60, %v3271_v35  ;;  %v3276_v40 = vmul.f32 %v4825_v28, %v5697_v13 }
 0x273   :  { %v4021_v18 = vadd.f32 %v4020_v48, %v3121_v49  ;;  %v3083_v32 = vpop.f32.mrb[42].mxu0  ;;  %v3123_v61 = vpop.f32.mrb[74].mxu1  ;;  %4848 = vtanh.f32 %v3994_v51  ;;  %v3324_v59 = vmul.f32 %v4827_v58, %v5697_v13  ;;  %v3422_v53 = vadd.f32 %v3421_v20, %v3319_v34 }
 0x274   :  { %v4829_v22 = vpop.eup %4828  ;;  %v3996_v33 = vadd.f32 %v3083_v32, %v5657_v27  ;;  %v4023_v55 = vadd.f32 %v4022_v25, %v3123_v61  ;;  %v3085_v0 = vpop.f32.mrb[43].mxu0  ;;  %4850 = vtanh.f32 %v4019_v6  ;;  %3367 = vadd.xlane.f32.xlu0 %v3366_v31  ;;  %v4032_v25 = vadd.f32 %v5660_v26, %v5665_v45 }
 0x275   :  { %v3125_v30 = vpop.f32.mrb[75].mxu1  ;;  %v4831_v15 = vpop.eup %4830  ;;  %v3997_v17 = vadd.f32 %v3085_v0, %v5665_v45  ;;  %4852 = vtanh.f32 %v3995_v47  ;;  %v3428_v37 = vadd.f32 %v5634_v3, %v3324_v59  ;;  %v3277_v38 = vmul.f32 %v4829_v22, %v5721_v56 }
 0x276   :  { %v4025_v2 = vadd.f32 %v4024_v19, %v3125_v30  ;;  %v4833_v1 = vpop.eup %4832  ;;  %v3325_v9 = vmul.f32 %v4831_v15, %v5721_v56  ;;  %4854 = vtanh.f32 %v4021_v18  ;;  %v3372_v19 = vadd.f32 %v5554_v54, %v3276_v40 }
 0x277   :  { %v4835_v12 = vpop.eup %4834  ;;  %v3282_v48 = vmul.f32 %v4833_v1, %v5697_v13  ;;  %4856 = vtanh.f32 %v3996_v33  ;;  %v3129_v42 = vpop.f32.mrb[76].mxu1 }
 0x278   :  { %v4837_v46 = vpop.eup %4836  ;;  %v3429_v41 = vadd.f32 %v3428_v37, %v3325_v9  ;;  %4858 = vtanh.f32 %v4023_v55  ;;  %v3089_v3 = vpop.f32.mrb[44].mxu0  ;;  %3423 = vadd.xlane.f32.xlu0 %v3422_v53  ;;  %v3330_v24 = vmul.f32 %v4835_v12, %v5697_v13  ;;  %v4027_v60 = vadd.f32 %v5735_v36, %v3129_v42 }
 0x279   :  { %v4839_v44 = vpop.eup %4838  ;;  %v3283_v10 = vmul.f32 %v4837_v46, %v5721_v56  ;;  %v3379_v50 = vadd.f32 %v5563_v52, %v3282_v48  ;;  %4860 = vtanh.f32 %v3997_v17  ;;  %v3998_v26 = vadd.f32 %v3089_v3, %v5657_v27  ;;  %v3091_v63 = vpop.f32.mrb[45].mxu0 }
 0x27a   :  { %v4841_v35 = vpop.eup %4840  ;;  %3430 = vadd.xlane.f32.xlu1 %v3429_v41  ;;  %v3131_v54 = vpop.f32.mrb[77].mxu1  ;;  %v3373_v28 = vadd.f32 %v3372_v19, %v3277_v38  ;;  %4862 = vtanh.f32 %v4025_v2  ;;  %v3999_v6 = vadd.f32 %v3091_v63, %v5665_v45 }
 0x27b   :  { %v4843_v51 = vpop.eup %4842  ;;  %v4029_v8 = vadd.f32 %v5739_v11, %v3131_v54  ;;  %v3093_v49 = vpop.f32.mrb[46].mxu0  ;;  %v3380_v34 = vadd.f32 %v3379_v50, %v3283_v10  ;;  %4864 = vtanh.f32 %v3998_v26  ;;  %v3288_v61 = vmul.f32 %v4841_v35, %v5697_v13 }
 0x27c   :  { %v3133_v52 = vpop.f32.mrb[78].mxu1  ;;  %v4845_v58 = vpop.eup %4844  ;;  %v4000_v47 = vadd.f32 %v3093_v49, %v5657_v27  ;;  %4866 = vtanh.f32 %v4027_v60  ;;  %3374 = vadd.xlane.f32.xlu0 %v3373_v28  ;;  %v3331_v27 = vmul.f32 %v4839_v44, %v5721_v56  ;;  %v3336_v59 = vmul.f32 %v4843_v51, %v5697_v13 }
 0x27d   :  { %v4031_v18 = vadd.f32 %v5743_v5, %v3133_v52  ;;  %v3095_v32 = vpop.f32.mrb[47].mxu0  ;;  %v3135_v36 = vpop.f32.mrb[79].mxu1  ;;  %v3289_v11 = vmul.f32 %v4845_v58, %v5721_v56  ;;  %4868 = vtanh.f32 %v3999_v6  ;;  %v3386_v0 = vadd.f32 %v5568_v23, %v3288_v61 }
 0x27e   :  { %v4847_v31 = vpop.eup %4846  ;;  %v4001_v22 = vadd.f32 %v3095_v32, %v5665_v45  ;;  %v4033_v33 = vadd.f32 %v4032_v25, %v3135_v36  ;;  %3381 = vadd.xlane.f32.xlu1 %v3380_v34  ;;  %v3435_v5 = vadd.f32 %v5651_v7, %v3330_v24  ;;  %4870 = vtanh.f32 %v4029_v8 }
 0x27f   :  { %v4849_v55 = vpop.eup %4848  ;;  %v3337_v15 = vmul.f32 %v4847_v31, %v5721_v56  ;;  %4872 = vtanh.f32 %v4000_v47  ;;  %v3387_v2 = vadd.f32 %v3386_v0, %v3289_v11  ;;  %v3442_v23 = vadd.f32 %v5668_v39, %v3336_v59 }
 0x280   :  { %v4851_v30 = vpop.eup %4850  ;;  %v3294_v45 = vmul.f32 %v4849_v55, %v5697_v13  ;;  %v3436_v20 = vadd.f32 %v3435_v5, %v3331_v27  ;;  %4874 = vtanh.f32 %v4031_v18 }
 0x281   :  { %v4853_v17 = vpop.eup %4852  ;;  %v3342_v1 = vmul.f32 %v4851_v30, %v5697_v13  ;;  %4876 = vtanh.f32 %v4001_v22  ;;  %v3443_v38 = vadd.f32 %v3442_v23, %v3337_v15  ;;  %v3857_v22 = vld [vmem:[#allocation2] ss:$0 sm:$0xff] }
 0x282   :  { %v4855_v9 = vpop.eup %4854  ;;  %v3295_v7 = vmul.f32 %v4853_v17, %v5721_v56  ;;  %v3393_v37 = vadd.f32 %v5583_v62, %v3294_v45  ;;  %3388 = vadd.xlane.f32.xlu1 %v3387_v2  ;;  %3437 = vadd.xlane.f32.xlu0 %v3436_v20  ;;  %4878 = vtanh.f32 %v4033_v33 }
 0x283   :  { %v4857_v40 = vpop.eup %4856  ;;  %v3343_v12 = vmul.f32 %v4855_v9, %v5721_v56  ;;  %v3449_v53 = vadd.f32 %v5685_v21, %v3342_v1 }
 0x284   :  { %v4859_v48 = vpop.eup %4858  ;;  %v3394_v46 = vadd.f32 %v3393_v37, %v3295_v7  ;;  %v3300_v25 = vmul.f32 %v4857_v40, %v5697_v13 }
 0x285   :  { %v4861_v41 = vpop.eup %4860  ;;  %v3450_v39 = vadd.f32 %v3449_v53, %v3343_v12  ;;  %v3348_v19 = vmul.f32 %v4859_v48, %v5697_v13 }
 0x286   :  { %v4863_v44 = vpop.eup %4862  ;;  %v3301_v62 = vmul.f32 %v4861_v41, %v5721_v56  ;;  %v3400_v3 = vadd.f32 %v5590_v57, %v3300_v25  ;;  %3444 = vadd.xlane.f32.xlu1 %v3443_v38  ;;  %3395 = vadd.xlane.f32.xlu0 %v3394_v46 }
 0x287   :  { %v4865_v42 = vpop.eup %4864  ;;  %v3349_v21 = vmul.f32 %v4863_v44, %v5721_v56  ;;  %v3456_v10 = vadd.f32 %v5689_v16, %v3348_v19 }
 0x288   :  { %v4867_v50 = vpop.eup %4866  ;;  %v3401_v24 = vadd.f32 %v3400_v3, %v3301_v62  ;;  %v3306_v35 = vmul.f32 %v4865_v42, %v5697_v13 }
 0x289   :  { %v4869_v26 = vpop.eup %4868  ;;  %v3457_v60 = vadd.f32 %v3456_v10, %v3349_v21  ;;  %v3354_v63 = vmul.f32 %v4867_v50, %v5697_v13 }
 0x28a   :  { %v4871_v54 = vpop.eup %4870  ;;  %v3307_v28 = vmul.f32 %v4869_v26, %v5721_v56  ;;  %v3407_v57 = vadd.f32 %v5605_v14, %v3306_v35  ;;  %3402 = vadd.xlane.f32.xlu1 %v3401_v24  ;;  %3451 = vadd.xlane.f32.xlu0 %v3450_v39 }
 0x28b   :  { %v4873_v51 = vpop.eup %4872  ;;  %v3355_v6 = vmul.f32 %v4871_v54, %v5721_v56  ;;  %v3463_v16 = vadd.f32 %v5712_v43, %v3354_v63 }
 0x28c   :  { %v4875_v8 = vpop.eup %4874  ;;  %v3408_v49 = vadd.f32 %v3407_v57, %v3307_v28  ;;  %v3312_v52 = vmul.f32 %v4873_v51, %v5697_v13 }
 0x28d   :  { %v4877_v34 = vpop.eup %4876  ;;  %v3464_v58 = vadd.f32 %v3463_v16, %v3355_v6  ;;  %v3360_v47 = vmul.f32 %v4875_v8, %v5697_v13 }
 0x28e   :  { %v4879_v18 = vpop.eup %4878  ;;  %v3313_v32 = vmul.f32 %v4877_v34, %v5721_v56  ;;  %v3414_v14 = vadd.f32 %v5612_v29, %v3312_v52  ;;  %3458 = vadd.xlane.f32.xlu1 %v3457_v60  ;;  %3409 = vadd.xlane.f32.xlu0 %v3408_v49 }
 0x28f   :  { %v3361_v36 = vmul.f32 %v4879_v18, %v5721_v56  ;;  %v3470_v61 = vadd.f32 %v5726_v4, %v3360_v47 }
 0x290   :  { %v3415_v43 = vadd.f32 %v3414_v14, %v3313_v32 }
 0x291   :  { %v3471_v31 = vadd.f32 %v3470_v61, %v3361_v36 }
 0x292   :  { %3416 = vadd.xlane.f32.xlu1 %v3415_v43  ;;  %3465 = vadd.xlane.f32.xlu0 %v3464_v58 }
 0x296   :  { %3472 = vadd.xlane.f32.xlu1 %v3471_v31 }
 0x301   :  { %v3368_v33 = vpop.xlane.xlu0 %3367 }
 0x302   :  { %v3481_v13 = vadd.f32 %v3857_v22, %v3368_v33 }
 0x304   :  { %3498 = vst.msk [vmem:[%s5874_s5] sm:$0xff] %vm3497_vm0, %v3481_v13 }
 0x305   :  { %v3424_v29 = vpop.xlane.xlu0 %3423 }
 0x306   :  { %v3489_v55 = vadd.f32 %v3857_v22, %v3424_v29 }
 0x307   :  { %v3431_v11 = vpop.xlane.xlu1 %3430 }
 0x308   :  { %v3490_v56 = vadd.f32 %v3857_v22, %v3431_v11  ;;  %3506 = vst.msk [vmem:[%s5874_s5 + $0x40] sm:$0xff] %vm3497_vm0, %v3489_v55 }
 0x309   :  { %v3375_v4 = vpop.xlane.xlu0 %3374 }
 0x30a   :  { %3507 = vst.msk [vmem:[%s5874_s5 + $0x48] sm:$0xff] %vm3497_vm0, %v3490_v56  ;;  %v3482_v27 = vadd.f32 %v3857_v22, %v3375_v4 }
 0x30b   :  { %v3382_v0 = vpop.xlane.xlu1 %3381 }
 0x30c   :  { %v3483_v5 = vadd.f32 %v3857_v22, %v3382_v0  ;;  %3499 = vst.msk [vmem:[%s5874_s5 + $0x8] sm:$0xff] %vm3497_vm0, %v3482_v27 }
 0x30e   :  { %3500 = vst.msk [vmem:[%s5874_s5 + $0x10] sm:$0xff] %vm3497_vm0, %v3483_v5 }
 0x30f   :  { %v3389_v30 = vpop.xlane.xlu1 %3388  ;;  %v3438_v59 = vpop.xlane.xlu0 %3437 }
 0x310   :  { %v3484_v15 = vadd.f32 %v3857_v22, %v3389_v30  ;;  %v3491_v45 = vadd.f32 %v3857_v22, %v3438_v59 }
 0x312   :  { %3501 = vst.msk [vmem:[%s5874_s5 + $0x18] sm:$0xff] %vm3497_vm0, %v3484_v15  ;;  %3508 = vst.msk [vmem:[%s5874_s5 + $0x50] sm:$0xff] %vm3497_vm0, %v3491_v45 }
 0x313   :  { %v3445_v17 = vpop.xlane.xlu1 %3444  ;;  %v3396_v2 = vpop.xlane.xlu0 %3395 }
 0x314   :  { %v3492_v20 = vadd.f32 %v3857_v22, %v3445_v17  ;;  %v3485_v1 = vadd.f32 %v3857_v22, %v3396_v2 }
 0x316   :  { %3509 = vst.msk [vmem:[%s5874_s5 + $0x58] sm:$0xff] %vm3497_vm0, %v3492_v20  ;;  %3502 = vst.msk [vmem:[%s5874_s5 + $0x20] sm:$0xff] %vm3497_vm0, %v3485_v1 }
 0x317   :  { %v3403_v9 = vpop.xlane.xlu1 %3402  ;;  %v3452_v23 = vpop.xlane.xlu0 %3451 }
 0x318   :  { %v3486_v7 = vadd.f32 %v3857_v22, %v3403_v9  ;;  %v3493_v37 = vadd.f32 %v3857_v22, %v3452_v23 }
 0x31a   :  { %3503 = vst.msk [vmem:[%s5874_s5 + $0x28] sm:$0xff] %vm3497_vm0, %v3486_v7  ;;  %3510 = vst.msk [vmem:[%s5874_s5 + $0x60] sm:$0xff] %vm3497_vm0, %v3493_v37 }
 0x31b   :  { %v3459_v40 = vpop.xlane.xlu1 %3458  ;;  %v3410_v12 = vpop.xlane.xlu0 %3409 }
 0x31c   :  { %v3494_v53 = vadd.f32 %v3857_v22, %v3459_v40  ;;  %v3487_v48 = vadd.f32 %v3857_v22, %v3410_v12 }
 0x31e   :  { %3511 = vst.msk [vmem:[%s5874_s5 + $0x68] sm:$0xff] %vm3497_vm0, %v3494_v53  ;;  %3504 = vst.msk [vmem:[%s5874_s5 + $0x30] sm:$0xff] %vm3497_vm0, %v3487_v48 }
 0x31f   :  { %v3417_v38 = vpop.xlane.xlu1 %3416  ;;  %v3466_v46 = vpop.xlane.xlu0 %3465 }
 0x320   :  { %v3488_v25 = vadd.f32 %v3857_v22, %v3417_v38  ;;  %v3495_v41 = vadd.f32 %v3857_v22, %v3466_v46 }
 0x322   :  { %3505 = vst.msk [vmem:[%s5874_s5 + $0x38] sm:$0xff] %vm3497_vm0, %v3488_v25  ;;  %3512 = vst.msk [vmem:[%s5874_s5 + $0x70] sm:$0xff] %vm3497_vm0, %v3495_v41 }
 0x323   :  { %v3473_v39 = vpop.xlane.xlu1 %3472 }
 0x324   :  { %v3496_v19 = vadd.f32 %v3857_v22, %v3473_v39 }
 0x326   :  { %3513 = vst.msk [vmem:[%s5874_s5 + $0x78] sm:$0xff] %vm3497_vm0, %v3496_v19 }
 0x327   :  { %3518 = vsyncpa [#allocation4], 1 }
 0x328   :  { %3519 = vsyncpa [#allocation6], 1 }
 0x329   :  { %3520 = vsyncpa [#allocation9], 1 }

</bundles_post_ra>
